<compile_context>
chip_gen: v7x
topology: tpu7x:2x2x1
jax: 0.10.0
libtpu: 0.0.40
codegen_flags: <defaults>
</compile_context>

<pallas_src>
import jax
import jax.numpy as jnp
from jax.experimental import pallas as pl
from jax.experimental.pallas import tpu as pltpu

N_IN = 21
H1 = 256
H2 = 512
N_OUT = 12
OUT_PAD = 128          # 12 outputs zero-padded to 128 -> unmasked lane-dense stores
MAX_TILE_B = 1024      # tunable; 1024-2048 is the sweet spot on v5e/v6e/v7x
MIN_TILE_B = 256
USE_BF16_OPERANDS = False  # flip if ~1e-2 tolerance is acceptable (2-4x MXU win)


def _round_up(x, m):
    return ((x + m - 1) // m) * m


def _choose_tile(batch):
    """Pick the batch tile: as large as possible, but keep >=2 grid tiles when the
    batch allows so the grid's parallel axis can be sharded across TensorCores
    (v7x megacore). VMEM use at TILE_B=1024 is < 8 MB, far under every limit."""
    half = -(-batch // 2)                      # cdiv(batch, 2)
    tile = min(MAX_TILE_B, _round_up(half, MIN_TILE_B))
    return max(tile, MIN_TILE_B)


def _mlp_kernel(x_ref, w1_ref, b1_ref, w2_ref, b2_ref, w3_ref, b3_ref, o_ref):
    # x_ref: (TILE_B, 21); weights/biases are VMEM-resident (constant index_map).
    x = x_ref[...]
    w1 = w1_ref[...]
    w2 = w2_ref[...]
    w3 = w3_ref[...]
    if USE_BF16_OPERANDS:
        x, w1, w2, w3 = (t.astype(jnp.bfloat16) for t in (x, w1, w2, w3))

    h1 = jnp.dot(x, w1, preferred_element_type=jnp.float32) + b1_ref[...]
    h1 = jnp.maximum(h1, 0.0)
    if USE_BF16_OPERANDS:
        h1 = h1.astype(jnp.bfloat16)

    h2 = jnp.dot(h1, w2, preferred_element_type=jnp.float32) + b2_ref[...]
    h2 = jnp.maximum(h2, 0.0)
    if USE_BF16_OPERANDS:
        h2 = h2.astype(jnp.bfloat16)

    o_ref[...] = jnp.dot(h2, w3, preferred_element_type=jnp.float32) + b3_ref[...]


@jax.jit
def mlp_forward(x, params):
    """x: (B, 21) f32. params: pre-transposed (in,out) weights, (1,out) biases,
    with w3/b3 already zero-padded to OUT_PAD columns (see init_params)."""
    w1, b1 = params["w1"], params["b1"]            # (21, 256), (1, 256)
    w2, b2 = params["w2"], params["b2"]            # (256, 512), (1, 512)
    w3, b3 = params["w3"], params["b3"]            # (512, 128), (1, 128) pre-padded

    B = x.shape[0]
    tile_b = _choose_tile(B)
    n_tiles = pl.cdiv(B, tile_b)
    B_pad = n_tiles * tile_b

    # Pad batch rows only when needed (no feature-column padding: K=21 is legal
    # as a full-extent last block dim and the MXU pads K internally).
    if B_pad != B:
        x_in = jnp.zeros((B_pad, N_IN), x.dtype).at[:B, :].set(x)
    else:
        x_in = x

    # Streaming x / out tiles follow the grid; weights/biases use a constant
    # index_map so Pallas keeps a single VMEM-resident copy across grid steps.
    x_spec = pl.BlockSpec((tile_b, N_IN), lambda i: (i, 0))
    out_spec = pl.BlockSpec((tile_b, OUT_PAD), lambda i: (i, 0))
    resident = lambda shape: pl.BlockSpec(shape, lambda i: (0, 0))

    flops = 2 * B_pad * (N_IN * H1 + H1 * H2 + H2 * OUT_PAD)
    weight_bytes = 4 * (N_IN * H1 + H1 + H1 * H2 + H2 + H2 * OUT_PAD + OUT_PAD)
    bytes_accessed = 4 * B_pad * (N_IN + OUT_PAD) + weight_bytes

    out_p = pl.pallas_call(
        _mlp_kernel,
        out_shape=jax.ShapeDtypeStruct((B_pad, OUT_PAD), jnp.float32),
        grid_spec=pltpu.PrefetchScalarGridSpec(
            num_scalar_prefetch=0,
            grid=(n_tiles,),
            in_specs=[
                x_spec,
                resident((N_IN, H1)), resident((1, H1)),
                resident((H1, H2)), resident((1, H2)),
                resident((H2, OUT_PAD)), resident((1, OUT_PAD)),
            ],
            out_specs=out_spec,
        ),
        compiler_params=pltpu.CompilerParams(
            dimension_semantics=("parallel",),
            # TILE_B=1024 uses < 8 MB; 32 MB leaves headroom and covers v5e's
            # small 16 MB default scoped VMEM limit.
            vmem_limit_bytes=32 * 1024 * 1024,
        ),
        cost_estimate=pl.CostEstimate(
            flops=flops, transcendentals=0, bytes_accessed=bytes_accessed
        ),
    )(x_in, w1, b1, w2, b2, w3, b3)

    return out_p[:B, :N_OUT]


def init_params(key):
    """Deterministic init matching the PyTorch module's layer shapes.

    PyTorch nn.Linear stores weight as (out, in); here we store the transposed
    (in, out) form (numerically identical for y = x @ W^T + b), and pre-pad the
    last layer to OUT_PAD output columns so no per-call padding work is needed.
    """
    dims = [(N_IN, H1), (H1, H2), (H2, N_OUT)]
    params = {}
    keys = jax.random.split(key, 2 * len(dims))
    for i, (din, dout) in enumerate(dims):
        bound = 1.0 / jnp.sqrt(jnp.float32(din))
        w = jax.random.uniform(keys[2 * i], (din, dout), jnp.float32, -bound, bound)
        b = jax.random.uniform(keys[2 * i + 1], (1, dout), jnp.float32, -bound, bound)
        params[f"w{i + 1}"] = w
        params[f"b{i + 1}"] = b
    # Pre-pad layer 3 to lane-dense 128 output columns (done once, not per call).
    params["w3"] = jnp.zeros((H2, OUT_PAD), jnp.float32).at[:, :N_OUT].set(params["w3"])
    params["b3"] = jnp.zeros((1, OUT_PAD), jnp.float32).at[:, :N_OUT].set(params["b3"])
    return params


def mlp_reference(x, p):
    h1 = jnp.maximum(x @ p["w1"] + p["b1"], 0.0)
    h2 = jnp.maximum(h1 @ p["w2"] + p["b2"], 0.0)
    out = h2 @ p["w3"] + p["b3"]          # padded cols of w3/b3 are zero
    return out[:, :N_OUT]


if __name__ == "__main__":
    key = jax.random.PRNGKey(0)
    k_params, k_x = jax.random.split(key)
    params = init_params(k_params)

    # Small batch of 21-feature rows (what forward() implies).
    x = jax.random.normal(k_x, (2, N_IN), jnp.float32)
    out = jax.block_until_ready(mlp_forward(x, params))
    ref = mlp_reference(x, params)
    assert out.shape == (2, N_OUT)
    assert jnp.allclose(out, ref, atol=1e-4, rtol=1e-4)

    # Also exercise a batch that spans multiple grid steps / row padding.
    x_big = jax.random.normal(k_x, (1000, N_IN), jnp.float32)
    out_big = jax.block_until_ready(mlp_forward(x_big, params))
    ref_big = mlp_reference(x_big, params)
    assert out_big.shape == (1000, N_OUT)
    assert jnp.allclose(out_big, ref_big, atol=1e-4, rtol=1e-4)

    print("KERNEL_OK")
</pallas_src>

<mosaic_0001>
module attributes {stable_mosaic.version = 11 : i64} {
  func.func @_mlp_kernel(%arg0: i32, %arg1: memref<256x21xf32, #tpu.memory_space<vmem>>, %arg2: memref<21x256xf32, #tpu.memory_space<vmem>>, %arg3: memref<1x256xf32, #tpu.memory_space<vmem>>, %arg4: memref<256x512xf32, #tpu.memory_space<vmem>>, %arg5: memref<1x512xf32, #tpu.memory_space<vmem>>, %arg6: memref<512x128xf32, #tpu.memory_space<vmem>>, %arg7: memref<1x128xf32, #tpu.memory_space<vmem>>, %arg8: memref<256x128xf32, #tpu.memory_space<vmem>>) attributes {dimension_semantics = [#tpu.dimension_semantics<parallel>], iteration_bounds = array<i64: 1>, scalar_prefetch = 0 : i64, scratch_operands = 0 : i64, tpu.core_type = #tpu.core_type<tc>, window_params = [{transform_indices = @transform_0, window_bounds = array<i64: 256, 21>}, {pipeline_mode = #tpu.pipeline_mode<synchronous>, transform_indices = @transform_1, window_bounds = array<i64: 21, 256>}, {pipeline_mode = #tpu.pipeline_mode<synchronous>, transform_indices = @transform_2, window_bounds = array<i64: 1, 256>}, {pipeline_mode = #tpu.pipeline_mode<synchronous>, transform_indices = @transform_3, window_bounds = array<i64: 256, 512>}, {pipeline_mode = #tpu.pipeline_mode<synchronous>, transform_indices = @transform_4, window_bounds = array<i64: 1, 512>}, {pipeline_mode = #tpu.pipeline_mode<synchronous>, transform_indices = @transform_5, window_bounds = array<i64: 512, 128>}, {pipeline_mode = #tpu.pipeline_mode<synchronous>, transform_indices = @transform_6, window_bounds = array<i64: 1, 128>}, {transform_indices = @transform_7, window_bounds = array<i64: 256, 128>}]} {
    %c0 = arith.constant 0 : index
    %c0_0 = arith.constant 0 : index
    %0 = vector.load %arg1[%c0, %c0_0] : memref<256x21xf32, #tpu.memory_space<vmem>>, vector<256x21xf32>
    %c0_1 = arith.constant 0 : index
    %c0_2 = arith.constant 0 : index
    %1 = vector.load %arg2[%c0_1, %c0_2] : memref<21x256xf32, #tpu.memory_space<vmem>>, vector<21x256xf32>
    %c0_3 = arith.constant 0 : index
    %c0_4 = arith.constant 0 : index
    %2 = vector.load %arg4[%c0_3, %c0_4] : memref<256x512xf32, #tpu.memory_space<vmem>>, vector<256x512xf32>
    %c0_5 = arith.constant 0 : index
    %c0_6 = arith.constant 0 : index
    %3 = vector.load %arg6[%c0_5, %c0_6] : memref<512x128xf32, #tpu.memory_space<vmem>>, vector<512x128xf32>
    %cst = arith.constant dense<0.000000e+00> : vector<256x256xf32>
    %4 = tpu.matmul %0, %1, %cst {dimension_numbers = #tpu.dot_dimension_numbers<[1], [0], [0], [1], [0, 0, 1, 1], [], []>} : vector<256x21xf32>, vector<21x256xf32>, vector<256x256xf32> -> vector<256x256xf32>
    %c0_7 = arith.constant 0 : index
    %c0_8 = arith.constant 0 : index
    %5 = vector.load %arg3[%c0_7, %c0_8] : memref<1x256xf32, #tpu.memory_space<vmem>>, vector<1x256xf32>
    %6 = vector.broadcast %5 : vector<1x256xf32> to vector<256x256xf32>
    %7 = arith.addf %4, %6 : vector<256x256xf32>
    %cst_9 = arith.constant 0.000000e+00 : f32
    %8 = vector.broadcast %cst_9 : f32 to vector<256x256xf32>
    %9 = arith.maximumf %7, %8 : vector<256x256xf32>
    %cst_10 = arith.constant dense<0.000000e+00> : vector<256x512xf32>
    %10 = tpu.matmul %9, %2, %cst_10 {dimension_numbers = #tpu.dot_dimension_numbers<[1], [0], [0], [1], [0, 0, 1, 1], [], []>} : vector<256x256xf32>, vector<256x512xf32>, vector<256x512xf32> -> vector<256x512xf32>
    %c0_11 = arith.constant 0 : index
    %c0_12 = arith.constant 0 : index
    %11 = vector.load %arg5[%c0_11, %c0_12] : memref<1x512xf32, #tpu.memory_space<vmem>>, vector<1x512xf32>
    %12 = vector.broadcast %11 : vector<1x512xf32> to vector<256x512xf32>
    %13 = arith.addf %10, %12 : vector<256x512xf32>
    %cst_13 = arith.constant 0.000000e+00 : f32
    %14 = vector.broadcast %cst_13 : f32 to vector<256x512xf32>
    %15 = arith.maximumf %13, %14 : vector<256x512xf32>
    %cst_14 = arith.constant dense<0.000000e+00> : vector<256x128xf32>
    %16 = tpu.matmul %15, %3, %cst_14 {dimension_numbers = #tpu.dot_dimension_numbers<[1], [0], [0], [1], [0, 0, 1, 1], [], []>} : vector<256x512xf32>, vector<512x128xf32>, vector<256x128xf32> -> vector<256x128xf32>
    %c0_15 = arith.constant 0 : index
    %c0_16 = arith.constant 0 : index
    %17 = vector.load %arg7[%c0_15, %c0_16] : memref<1x128xf32, #tpu.memory_space<vmem>>, vector<1x128xf32>
    %18 = vector.broadcast %17 : vector<1x128xf32> to vector<256x128xf32>
    %19 = arith.addf %16, %18 : vector<256x128xf32>
    %c0_17 = arith.constant 0 : index
    %c0_18 = arith.constant 0 : index
    %20 = vector.load %arg8[%c0_17, %c0_18] : memref<256x128xf32, #tpu.memory_space<vmem>>, vector<256x128xf32>
    tpu.vector_store %arg8[%c0_17, %c0_18], %19 {strides = array<i32>} : memref<256x128xf32, #tpu.memory_space<vmem>>, vector<256x128xf32>,
    return
  }
  func.func @transform_0(%arg0: i32) -> (i32, i32) {
    %c0_i32 = arith.constant 0 : i32
    %c0_i32_0 = arith.constant 0 : i32
    return %arg0, %c0_i32 : i32, i32
  }
  func.func @transform_1(%arg0: i32) -> (i32, i32) {
    %c0_i32 = arith.constant 0 : i32
    %c0_i32_0 = arith.constant 0 : i32
    %c0_i32_1 = arith.constant 0 : i32
    return %c0_i32, %c0_i32_0 : i32, i32
  }
  func.func @transform_2(%arg0: i32) -> (i32, i32) {
    %c0_i32 = arith.constant 0 : i32
    %c0_i32_0 = arith.constant 0 : i32
    %c0_i32_1 = arith.constant 0 : i32
    return %c0_i32, %c0_i32_0 : i32, i32
  }
  func.func @transform_3(%arg0: i32) -> (i32, i32) {
    %c0_i32 = arith.constant 0 : i32
    %c0_i32_0 = arith.constant 0 : i32
    %c0_i32_1 = arith.constant 0 : i32
    return %c0_i32, %c0_i32_0 : i32, i32
  }
  func.func @transform_4(%arg0: i32) -> (i32, i32) {
    %c0_i32 = arith.constant 0 : i32
    %c0_i32_0 = arith.constant 0 : i32
    %c0_i32_1 = arith.constant 0 : i32
    return %c0_i32, %c0_i32_0 : i32, i32
  }
  func.func @transform_5(%arg0: i32) -> (i32, i32) {
    %c0_i32 = arith.constant 0 : i32
    %c0_i32_0 = arith.constant 0 : i32
    %c0_i32_1 = arith.constant 0 : i32
    return %c0_i32, %c0_i32_0 : i32, i32
  }
  func.func @transform_6(%arg0: i32) -> (i32, i32) {
    %c0_i32 = arith.constant 0 : i32
    %c0_i32_0 = arith.constant 0 : i32
    %c0_i32_1 = arith.constant 0 : i32
    return %c0_i32, %c0_i32_0 : i32, i32
  }
  func.func @transform_7(%arg0: i32) -> (i32, i32) {
    %c0_i32 = arith.constant 0 : i32
    %c0_i32_0 = arith.constant 0 : i32
    return %arg0, %c0_i32 : i32, i32
  }
}

</mosaic_0001>

<bundles_post_ra>
// kernel: mlp_forward.1
= control target key start
LH: loop header
LB: loop body
LE: loop exit
PB: predicated region body
PF: predicated region fallthrough
CT: control target
= control target key end

     0   :  { %12 = vsyncpa [#allocation3], 0  ;;  %s3065_s0 = inlined_call_operand.vmem [shape: f32[256,21], index: 0, kind: input, shape index: {}]   ;;  %s3066_s1 = inlined_call_operand.vmem [shape: f32[21,256], index: 1, kind: input, shape index: {}]   ;;  %s3067_s2 = inlined_call_operand.vmem [shape: f32[1,256], index: 2, kind: input, shape index: {}]   ;;  %s3068_s3 = inlined_call_operand.hbm [shape: f32[256,512], index: 3, kind: input, shape index: {}]   ;;  %s3069_s4 = inlined_call_operand.vmem [shape: f32[1,512], index: 4, kind: input, shape index: {}]   ;;  %s3070_s5 = inlined_call_operand.hbm [shape: f32[512,128], index: 5, kind: input, shape index: {}]   ;;  %s3071_s6 = inlined_call_operand.vmem [shape: f32[1,128], index: 6, kind: input, shape index: {}]   ;;  %s3072_s7 = inlined_call_operand.vmem [shape: f32[256,128], index: 7, kind: output, shape index: {}]  }
   0x1   :  { %13 = vsyncpa [#allocation5], 0  ;;  %s2304_s24 = smov [#allocation2]   ;;  %s2256_s28 = scalar_lea.hbm %s3068_s3, 16384 }
   0x2   :  { %s25_s25 = sshll.u32 %s2304_s24, 4  ;;  %p2257_p0 = scmp.ne.s32.totalorder %s3068_s3, %s2256_s28  ;;  %s26_s25 = int_to_ptr.vmem [resolvable:$true] %s25_s25 }
   0x3   :  { %p2260_p1 = scmp.lt.u32.totalorder %s2256_s28, %s3068_s3 }
   0x5   :  { %p2262_p2 = pnand %p2260_p1, %p2257_p0 }
   0x7   :  { %2265 = shalt.err (!%p2262_p2)
}
   0x8   :  { %s2266_s10 = scalar_lea.vmem %s26_s25, 16384  ;;  %p2271_p4 = scmp.lt.s32.totalorder %s26_s25, %s26_s25 }
   0x9   :  { %p2267_p3 = scmp.ne.s32.totalorder %s26_s25, %s2266_s10  ;;  %p2272_p5 = scmp.lt.s32.totalorder %s2266_s10, %s2266_s10 }
   0xb   :  { %p2273_p6 = por %p2272_p5, %p2271_p4 }
   0xd   :  { %p2274_p7 = pnand %p2273_p6, %p2267_p3 }
   0xf   :  { %2277 = shalt.err (!%p2274_p7)
}
  0x10   :  { %s2305_s11 = smov 512   ;;  %s2306_s12 = smov 32  }
  0x11   :  { %31 = dma.hbm_to_vmem [thread:$0]  %s3068_s3, 16384, %s26_s25, [#allocation3], %s2305_s11, %s2305_s11, %s2306_s12  }
  0x12   :  { %s2307_s15 = smov [#allocation4]   ;;  %s2278_s19 = scalar_lea.hbm %s3070_s5, 8192 }
  0x13   :  { %s39_s16 = sshll.u32 %s2307_s15, 4  ;;  %p2279_p8 = scmp.ne.s32.totalorder %s3070_s5, %s2278_s19  ;;  %s40_s16 = int_to_ptr.vmem [resolvable:$true] %s39_s16 }
  0x14   :  { %p2282_p9 = scmp.lt.u32.totalorder %s2278_s19, %s3070_s5 }
  0x16   :  { %p2284_p10 = pnand %p2282_p9, %p2279_p8 }
  0x18   :  { %2287 = shalt.err (!%p2284_p10)
}
  0x19   :  { %s2288_s24 = scalar_lea.vmem %s40_s16, 8192  ;;  %p2293_p12 = scmp.lt.s32.totalorder %s40_s16, %s40_s16 }
  0x1a   :  { %p2289_p11 = scmp.ne.s32.totalorder %s40_s16, %s2288_s24  ;;  %p2294_p13 = scmp.lt.s32.totalorder %s2288_s24, %s2288_s24 }
  0x1c   :  { %p2295_p0 = por %p2294_p13, %p2293_p12 }
  0x1e   :  { %p2296_p1 = pnand %p2295_p0, %p2289_p11 }
  0x20   :  { %2299 = shalt.err (!%p2296_p1)
}
  0x21   :  { %s2308_s3 = smov 128   ;;  %s2309_s25 = smov 8  }
  0x22   :  { %45 = dma.hbm_to_vmem [thread:$0]  %s3070_s5, 8192, %s40_s16, [#allocation5], %s2308_s3, %s2308_s3, %s2309_s25  }
  0x23   :  { %2300 = dma.done.wait [#allocation3], 16384  }
  0x24   :  { %2301 = vsyncadd [#allocation3], 4294950912 }
  0x25   :  { %2302 = dma.done.wait [#allocation5], 8192  }
  0x26   :  { %2303 = vsyncadd [#allocation5], 4294959104  ;;  %v2310_v0 = vmov 0.0   ;;  %v87_v1 = vld [vmem:[%s3066_s1 + $0x8] sm:$0xff]  ;;  %v89_v2 = vld [vmem:[%s3066_s1 + $0x18] sm:$0xff]  ;;  %vm393_vm0 = vcmask 1044480  }
  0x27   :  { %464 = vmatprep.mubr.f32.mxu0 %v2310_v0  ;;  %v86_v3 = vld [vmem:[%s3066_s1] sm:$0xff]  ;;  %v1915_v4 = vpack.c.bf16 %v89_v2, %v87_v1  ;;  %v88_v5 = vld [vmem:[%s3066_s1 + $0x10] sm:$0xff]  ;;  %v91_v7 = vld [vmem:[%s3066_s1 + $0x28] sm:$0x1f]  ;;  %vm296_vm1 = vcmask 171008  }
  0x28   :  { %v1917_v6 = vpack.c.bf16 %v88_v5, %v86_v3  ;;  %v90_v8 = vld [vmem:[%s3066_s1 + $0x20] sm:$0x1f]  ;;  %v55_v10 = vld [vmem:[%s3065_s0 + $0x8] sm:$0xff]  ;;  %v95_v11 = vld [vmem:[#allocation2 + $0x18] sm:$0xff] }
  0x29   :  { %1916 = vmatprep.subr.bf16.mxu0 %v1915_v4  ;;  %v54_v9 = vld [vmem:[%s3065_s0] sm:$0xff]  ;;  %v99_v12 = vld [vmem:[#allocation2 + $0x38] sm:$0xff]  ;;  %v94_v13 = vld [vmem:[#allocation2 + $0x10] sm:$0xff] }
  0x2a   :  { %1918 = vmatpush1.bf16.msra.mxu0 %v1917_v6  ;;  %v98_v14 = vld [vmem:[#allocation2 + $0x30] sm:$0xff]  ;;  %v1983_v16 = vpack.c.bf16 %v99_v12, %v95_v11  ;;  %v103_v18 = vld [vmem:[#allocation2 + $0x58] sm:$0xff]  ;;  %v93_v28 = vld [vmem:[#allocation2 + $0x8] sm:$0xff] }
  0x2b   :  { %1880 = vmatprep.subr.msk.mxu0 %vm393_vm0, %v91_v7  ;;  %v56_v15 = vld [vmem:[%s3065_s0 + $0x10] sm:$0xff]  ;;  %v1985_v17 = vpack.c.bf16 %v98_v14, %v94_v13  ;;  %v107_v19 = vld [vmem:[#allocation2 + $0x78] sm:$0xff]  ;;  %v97_v29 = vld [vmem:[#allocation2 + $0x28] sm:$0xff] }
  0x2c   :  { %v1987_v20 = vpack.c.bf16 %v107_v19, %v103_v18  ;;  %v102_v21 = vld [vmem:[#allocation2 + $0x50] sm:$0xff]  ;;  %v111_v23 = vld [vmem:[#allocation2 + $0x98] sm:$0xff]  ;;  %v92_v30 = vld [vmem:[#allocation2] sm:$0xff]  ;;  %v1919_v34 = vpack.c.bf16 %v97_v29, %v93_v28 }
  0x2d   :  { %v106_v22 = vld [vmem:[#allocation2 + $0x70] sm:$0xff]  ;;  %v115_v24 = vld [vmem:[#allocation2 + $0xb8] sm:$0xff]  ;;  %v96_v35 = vld [vmem:[#allocation2 + $0x20] sm:$0xff] }
  0x2e   :  { %1881 = vmatpush1.msk.msra.mxu0 %vm393_vm0, %v90_v8  ;;  %v57_v25 = vld [vmem:[%s3065_s0 + $0x18] sm:$0xff]  ;;  %v110_v26 = vld [vmem:[#allocation2 + $0x90] sm:$0xff]  ;;  %v1989_v27 = vpack.c.bf16 %v106_v22, %v102_v21  ;;  %v1991_v31 = vpack.c.bf16 %v115_v24, %v111_v23  ;;  %v1921_v37 = vpack.c.bf16 %v96_v35, %v92_v30  ;;  %v101_v38 = vld [vmem:[#allocation2 + $0x48] sm:$0xff]  ;;  %1920 = vmatprep.subr.bf16.mxu1 %v1919_v34 }
  0x2f   :  { %1882 = vmatmul.mubr.msk.f32.vlgmr.msra.gmra.mrb[0].mxu0 %vm296_vm1, %v54_v9  ;;  %1984 = vmatprep.subr.bf16.mxu0 %v1983_v16  ;;  %v114_v32 = vld [vmem:[#allocation2 + $0xb0] sm:$0xff]  ;;  %v119_v33 = vld [vmem:[#allocation2 + $0xd8] sm:$0xff]  ;;  %v105_v39 = vld [vmem:[#allocation2 + $0x68] sm:$0xff] }
  0x30   :  { %470 = vmatprep.mubr.f32.mxu0 %v2310_v0  ;;  %1986 = vmatpush1.bf16.msra.mxu0 %v1985_v17  ;;  %v123_v36 = vld [vmem:[#allocation2 + $0xf8] sm:$0xff]  ;;  %v1923_v40 = vpack.c.bf16 %v105_v39, %v101_v38  ;;  %v100_v41 = vld [vmem:[#allocation2 + $0x40] sm:$0xff]  ;;  %v1993_v44 = vpack.c.bf16 %v114_v32, %v110_v26  ;;  %v109_v45 = vld [vmem:[#allocation2 + $0x88] sm:$0xff] }
  0x31   :  { %1988 = vmatprep.subr.bf16.mxu0 %v1987_v20  ;;  %v104_v42 = vld [vmem:[#allocation2 + $0x60] sm:$0xff]  ;;  %v113_v46 = vld [vmem:[#allocation2 + $0xa8] sm:$0xff]  ;;  %v1995_v47 = vpack.c.bf16 %v123_v36, %v119_v33  ;;  %v118_v48 = vld [vmem:[#allocation2 + $0xd0] sm:$0xff]  ;;  %1922 = vmatpush1.bf16.msra.mxu1 %v1921_v37 }
  0x32   :  { %v58_v43 = vld [vmem:[%s3065_s0 + $0x20] sm:$0xff]  ;;  %v122_v49 = vld [vmem:[#allocation2 + $0xf0] sm:$0xff]  ;;  %v127_v50 = vld [vmem:[#allocation2 + $0x118] sm:$0xff]  ;;  %v1925_v51 = vpack.c.bf16 %v104_v42, %v100_v41  ;;  %1924 = vmatprep.subr.bf16.mxu1 %v1923_v40  ;;  %v1927_v53 = vpack.c.bf16 %v113_v46, %v109_v45 }
  0x33   :  { %1883 = vmatmul.mubr.msk.f32.gmra.mrb[2].mxu0 %vm296_vm1, %v55_v10  ;;  %v131_v52 = vld [vmem:[#allocation2 + $0x138] sm:$0xff]  ;;  %v108_v54 = vld [vmem:[#allocation2 + $0x80] sm:$0xff]  ;;  %v117_v56 = vld [vmem:[#allocation2 + $0xc8] sm:$0xff]  ;;  %v1997_v59 = vpack.c.bf16 %v122_v49, %v118_v48 }
  0x34   :  { %476 = vmatprep.mubr.f32.mxu0 %v2310_v0  ;;  %1990 = vmatpush1.bf16.msra.mxu0 %v1989_v27  ;;  %v112_v55 = vld [vmem:[#allocation2 + $0xa0] sm:$0xff]  ;;  %v121_v57 = vld [vmem:[#allocation2 + $0xe8] sm:$0xff]  ;;  %v1999_v60 = vpack.c.bf16 %v131_v52, %v127_v50  ;;  %v126_v61 = vld [vmem:[#allocation2 + $0x110] sm:$0xff] }
  0x35   :  { %1992 = vmatprep.subr.bf16.mxu0 %v1991_v31  ;;  %v59_v58 = vld [vmem:[%s3065_s0 + $0x28] sm:$0xff]  ;;  %v130_v62 = vld [vmem:[#allocation2 + $0x130] sm:$0xff]  ;;  %1926 = vmatpush1.bf16.msra.mxu1 %v1925_v51  ;;  %v1929_v63 = vpack.c.bf16 %v112_v55, %v108_v54  ;;  %v135_v1 = vld [vmem:[#allocation2 + $0x158] sm:$0xff]  ;;  %v1931_v3 = vpack.c.bf16 %v121_v57, %v117_v56 }
  0x36   :  { %1928 = vmatprep.subr.bf16.mxu1 %v1927_v53  ;;  %v139_v2 = vld [vmem:[#allocation2 + $0x178] sm:$0xff]  ;;  %v116_v4 = vld [vmem:[#allocation2 + $0xc0] sm:$0xff]  ;;  %v125_v6 = vld [vmem:[#allocation2 + $0x108] sm:$0xff]  ;;  %v2001_v9 = vpack.c.bf16 %v130_v62, %v126_v61 }
  0x37   :  { %1884 = vmatmul.mubr.msk.f32.gmra.mrb[4].mxu0 %vm296_vm1, %v56_v15  ;;  %v120_v5 = vld [vmem:[#allocation2 + $0xe0] sm:$0xff]  ;;  %v129_v7 = vld [vmem:[#allocation2 + $0x128] sm:$0xff]  ;;  %v60_v8 = vld [vmem:[%s3065_s0 + $0x30] sm:$0xff]  ;;  %v2003_v10 = vpack.c.bf16 %v139_v2, %v135_v1 }
  0x38   :  { %482 = vmatprep.mubr.f32.mxu0 %v2310_v0  ;;  %1994 = vmatpush1.bf16.msra.mxu0 %v1993_v44  ;;  %v134_v11 = vld [vmem:[#allocation2 + $0x150] sm:$0xff]  ;;  %v1933_v13 = vpack.c.bf16 %v120_v5, %v116_v4  ;;  %v124_v14 = vld [vmem:[#allocation2 + $0x100] sm:$0xff]  ;;  %v1935_v15 = vpack.c.bf16 %v129_v7, %v125_v6  ;;  %v143_v17 = vld [vmem:[#allocation2 + $0x198] sm:$0xff] }
  0x39   :  { %1996 = vmatprep.subr.bf16.mxu0 %v1995_v47  ;;  %1930 = vmatpush1.bf16.msra.mxu1 %v1929_v63  ;;  %v138_v12 = vld [vmem:[#allocation2 + $0x170] sm:$0xff]  ;;  %v128_v16 = vld [vmem:[#allocation2 + $0x120] sm:$0xff]  ;;  %v147_v18 = vld [vmem:[#allocation2 + $0x1b8] sm:$0xff] }
  0x3a   :  { %1932 = vmatprep.subr.bf16.mxu1 %v1931_v3  ;;  %v133_v19 = vld [vmem:[#allocation2 + $0x148] sm:$0xff]  ;;  %v61_v21 = vld [vmem:[%s3065_s0 + $0x38] sm:$0xff]  ;;  %v2005_v22 = vpack.c.bf16 %v138_v12, %v134_v11  ;;  %v1937_v23 = vpack.c.bf16 %v128_v16, %v124_v14  ;;  %v2007_v24 = vpack.c.bf16 %v147_v18, %v143_v17  ;;  %v146_v26 = vld [vmem:[#allocation2 + $0x1b0] sm:$0xff] }
  0x3b   :  { %1885 = vmatmul.mubr.msk.f32.gmra.mrb[6].mxu0 %vm296_vm1, %v57_v25  ;;  %v137_v20 = vld [vmem:[#allocation2 + $0x168] sm:$0xff]  ;;  %v142_v25 = vld [vmem:[#allocation2 + $0x190] sm:$0xff]  ;;  %v132_v27 = vld [vmem:[#allocation2 + $0x140] sm:$0xff] }
  0x3c   :  { %488 = vmatprep.mubr.f32.mxu0 %v2310_v0  ;;  %1998 = vmatpush1.bf16.msra.mxu0 %v1997_v59  ;;  %v1939_v28 = vpack.c.bf16 %v137_v20, %v133_v19  ;;  %v136_v29 = vld [vmem:[#allocation2 + $0x160] sm:$0xff]  ;;  %v151_v30 = vld [vmem:[#allocation2 + $0x1d8] sm:$0xff]  ;;  %v141_v32 = vld [vmem:[#allocation2 + $0x188] sm:$0xff]  ;;  %v2009_v35 = vpack.c.bf16 %v146_v26, %v142_v25 }
  0x3d   :  { %2000 = vmatprep.subr.bf16.mxu0 %v1999_v60  ;;  %1934 = vmatpush1.bf16.msra.mxu1 %v1933_v13  ;;  %v155_v31 = vld [vmem:[#allocation2 + $0x1f8] sm:$0xff]  ;;  %v145_v33 = vld [vmem:[#allocation2 + $0x1a8] sm:$0xff]  ;;  %v62_v34 = vld [vmem:[%s3065_s0 + $0x40] sm:$0xff]  ;;  %v1941_v36 = vpack.c.bf16 %v136_v29, %v132_v27 }
  0x3e   :  { %1936 = vmatprep.subr.bf16.mxu1 %v1935_v15  ;;  %v140_v37 = vld [vmem:[#allocation2 + $0x180] sm:$0xff]  ;;  %v2011_v38 = vpack.c.bf16 %v155_v31, %v151_v30  ;;  %v150_v39 = vld [vmem:[#allocation2 + $0x1d0] sm:$0xff]  ;;  %v1943_v41 = vpack.c.bf16 %v145_v33, %v141_v32  ;;  %v163_v44 = vld [vmem:[#allocation2 + $0x238] sm:$0xff] }
  0x3f   :  { %1886 = vmatmul.mubr.msk.f32.gmra.mrb[8].mxu0 %vm296_vm1, %v58_v43  ;;  %v154_v40 = vld [vmem:[#allocation2 + $0x1f0] sm:$0xff]  ;;  %v144_v42 = vld [vmem:[#allocation2 + $0x1a0] sm:$0xff]  ;;  %v159_v43 = vld [vmem:[#allocation2 + $0x218] sm:$0xff] }
  0x40   :  { %494 = vmatprep.mubr.f32.mxu0 %v2310_v0  ;;  %2002 = vmatpush1.bf16.msra.mxu0 %v2001_v9  ;;  %v149_v45 = vld [vmem:[#allocation2 + $0x1c8] sm:$0xff]  ;;  %v2013_v48 = vpack.c.bf16 %v154_v40, %v150_v39  ;;  %v1945_v49 = vpack.c.bf16 %v144_v42, %v140_v37  ;;  %v148_v50 = vld [vmem:[#allocation2 + $0x1c0] sm:$0xff]  ;;  %v2015_v51 = vpack.c.bf16 %v163_v44, %v159_v43  ;;  %v158_v52 = vld [vmem:[#allocation2 + $0x210] sm:$0xff] }
  0x41   :  { %2004 = vmatprep.subr.bf16.mxu0 %v2003_v10  ;;  %1938 = vmatpush1.bf16.msra.mxu1 %v1937_v23  ;;  %v153_v46 = vld [vmem:[#allocation2 + $0x1e8] sm:$0xff]  ;;  %v162_v53 = vld [vmem:[#allocation2 + $0x230] sm:$0xff]  ;;  %v152_v55 = vld [vmem:[#allocation2 + $0x1e0] sm:$0xff] }
  0x42   :  { %1940 = vmatprep.subr.bf16.mxu1 %v1939_v28  ;;  %v63_v47 = vld [vmem:[%s3065_s0 + $0x48] sm:$0xff]  ;;  %v1947_v54 = vpack.c.bf16 %v153_v46, %v149_v45  ;;  %v167_v56 = vld [vmem:[#allocation2 + $0x258] sm:$0xff]  ;;  %v64_v60 = vld [vmem:[%s3065_s0 + $0x50] sm:$0xff]  ;;  %v2017_v61 = vpack.c.bf16 %v162_v53, %v158_v52  ;;  %v1949_v62 = vpack.c.bf16 %v152_v55, %v148_v50 }
  0x43   :  { %1887 = vmatmul.mubr.msk.f32.gmra.mrb[10].mxu0 %vm296_vm1, %v59_v58  ;;  %v171_v57 = vld [vmem:[#allocation2 + $0x278] sm:$0xff]  ;;  %v157_v58 = vld [vmem:[#allocation2 + $0x208] sm:$0xff]  ;;  %v156_v63 = vld [vmem:[#allocation2 + $0x200] sm:$0xff] }
  0x44   :  { %500 = vmatprep.mubr.f32.mxu0 %v2310_v0  ;;  %2006 = vmatpush1.bf16.msra.mxu0 %v2005_v22  ;;  %v161_v59 = vld [vmem:[#allocation2 + $0x228] sm:$0xff]  ;;  %v2019_v1 = vpack.c.bf16 %v171_v57, %v167_v56  ;;  %v166_v2 = vld [vmem:[#allocation2 + $0x250] sm:$0xff]  ;;  %v160_v5 = vld [vmem:[#allocation2 + $0x220] sm:$0xff] }
  0x45   :  { %2008 = vmatprep.subr.bf16.mxu0 %v2007_v24  ;;  %1942 = vmatpush1.bf16.msra.mxu1 %v1941_v36  ;;  %v170_v3 = vld [vmem:[#allocation2 + $0x270] sm:$0xff]  ;;  %v1951_v4 = vpack.c.bf16 %v161_v59, %v157_v58  ;;  %v175_v6 = vld [vmem:[#allocation2 + $0x298] sm:$0xff]  ;;  %v169_v9 = vld [vmem:[#allocation2 + $0x268] sm:$0xff]  ;;  %v1953_v12 = vpack.c.bf16 %v160_v5, %v156_v63 }
  0x46   :  { %1944 = vmatprep.subr.bf16.mxu1 %v1943_v41  ;;  %v179_v7 = vld [vmem:[#allocation2 + $0x2b8] sm:$0xff]  ;;  %v2021_v11 = vpack.c.bf16 %v170_v3, %v166_v2  ;;  %v164_v13 = vld [vmem:[#allocation2 + $0x240] sm:$0xff]  ;;  %v174_v15 = vld [vmem:[#allocation2 + $0x290] sm:$0xff] }
  0x47   :  { %1888 = vmatmul.mubr.msk.f32.gmra.mrb[12].mxu0 %vm296_vm1, %v60_v8  ;;  %v165_v8 = vld [vmem:[#allocation2 + $0x248] sm:$0xff]  ;;  %v65_v10 = vld [vmem:[%s3065_s0 + $0x58] sm:$0xff]  ;;  %v2023_v14 = vpack.c.bf16 %v179_v7, %v175_v6  ;;  %v178_v16 = vld [vmem:[#allocation2 + $0x2b0] sm:$0xff] }
  0x48   :  { %506 = vmatprep.mubr.f32.mxu0 %v2310_v0  ;;  %2010 = vmatpush1.bf16.msra.mxu0 %v2009_v35  ;;  %v1955_v17 = vpack.c.bf16 %v169_v9, %v165_v8  ;;  %v168_v18 = vld [vmem:[#allocation2 + $0x260] sm:$0xff]  ;;  %v183_v19 = vld [vmem:[#allocation2 + $0x2d8] sm:$0xff]  ;;  %v177_v22 = vld [vmem:[#allocation2 + $0x2a8] sm:$0xff]  ;;  %v2025_v24 = vpack.c.bf16 %v178_v16, %v174_v15 }
  0x49   :  { %2012 = vmatprep.subr.bf16.mxu0 %v2011_v38  ;;  %1946 = vmatpush1.bf16.msra.mxu1 %v1945_v49  ;;  %v187_v20 = vld [vmem:[#allocation2 + $0x2f8] sm:$0xff]  ;;  %v66_v23 = vld [vmem:[%s3065_s0 + $0x60] sm:$0xff]  ;;  %v1957_v25 = vpack.c.bf16 %v168_v18, %v164_v13  ;;  %v182_v28 = vld [vmem:[#allocation2 + $0x2d0] sm:$0xff] }
  0x4a   :  { %1948 = vmatprep.subr.bf16.mxu1 %v1947_v54  ;;  %v172_v26 = vld [vmem:[#allocation2 + $0x280] sm:$0xff]  ;;  %v2027_v27 = vpack.c.bf16 %v187_v20, %v183_v19  ;;  %v186_v29 = vld [vmem:[#allocation2 + $0x2f0] sm:$0xff]  ;;  %v191_v32 = vld [vmem:[#allocation2 + $0x318] sm:$0xff] }
  0x4b   :  { %1889 = vmatmul.mubr.msk.f32.gmra.mrb[14].mxu0 %vm296_vm1, %v61_v21  ;;  %v173_v21 = vld [vmem:[#allocation2 + $0x288] sm:$0xff]  ;;  %v176_v31 = vld [vmem:[#allocation2 + $0x2a0] sm:$0xff]  ;;  %v195_v33 = vld [vmem:[#allocation2 + $0x338] sm:$0xff]  ;;  %v2029_v37 = vpack.c.bf16 %v186_v29, %v182_v28 }
  0x4c   :  { %512 = vmatprep.mubr.f32.mxu0 %v2310_v0  ;;  %2014 = vmatpush1.bf16.msra.mxu0 %v2013_v48  ;;  %v1959_v30 = vpack.c.bf16 %v177_v22, %v173_v21  ;;  %v185_v35 = vld [vmem:[#allocation2 + $0x2e8] sm:$0xff]  ;;  %v1961_v38 = vpack.c.bf16 %v176_v31, %v172_v26  ;;  %v180_v39 = vld [vmem:[#allocation2 + $0x2c0] sm:$0xff]  ;;  %v2031_v40 = vpack.c.bf16 %v195_v33, %v191_v32  ;;  %v190_v41 = vld [vmem:[#allocation2 + $0x310] sm:$0xff] }
  0x4d   :  { %2016 = vmatprep.subr.bf16.mxu0 %v2015_v51  ;;  %1950 = vmatpush1.bf16.msra.mxu1 %v1949_v62  ;;  %v67_v36 = vld [vmem:[%s3065_s0 + $0x68] sm:$0xff]  ;;  %v194_v42 = vld [vmem:[#allocation2 + $0x330] sm:$0xff]  ;;  %v184_v44 = vld [vmem:[#allocation2 + $0x2e0] sm:$0xff] }
  0x4e   :  { %1952 = vmatprep.subr.bf16.mxu1 %v1951_v4  ;;  %v199_v45 = vld [vmem:[#allocation2 + $0x358] sm:$0xff]  ;;  %v193_v48 = vld [vmem:[#allocation2 + $0x328] sm:$0xff]  ;;  %v68_v49 = vld [vmem:[%s3065_s0 + $0x70] sm:$0xff]  ;;  %v2033_v50 = vpack.c.bf16 %v194_v42, %v190_v41  ;;  %v1965_v51 = vpack.c.bf16 %v184_v44, %v180_v39  ;;  %v2311_v44 = vmov 0.0|0.0  }
  0x4f   :  { %1890 = vmatmul.mubr.msk.f32.gmra.mrb[16].mxu0 %vm296_vm1, %v62_v34  ;;  %v181_v34 = vld [vmem:[#allocation2 + $0x2c8] sm:$0xff]  ;;  %v203_v46 = vld [vmem:[#allocation2 + $0x378] sm:$0xff]  ;;  %v188_v52 = vld [vmem:[#allocation2 + $0x300] sm:$0xff] }
  0x50   :  { %518 = vmatprep.mubr.f32.mxu0 %v2310_v0  ;;  %2018 = vmatpush1.bf16.msra.mxu0 %v2017_v61  ;;  %v1963_v43 = vpack.c.bf16 %v185_v35, %v181_v34  ;;  %v2035_v53 = vpack.c.bf16 %v203_v46, %v199_v45  ;;  %v198_v54 = vld [vmem:[#allocation2 + $0x350] sm:$0xff]  ;;  %v192_v57 = vld [vmem:[#allocation2 + $0x320] sm:$0xff]  ;;  %v207_v58 = vld [vmem:[#allocation2 + $0x398] sm:$0xff]  ;;  %v286_v45 = vlaneseq }
  0x51   :  { %2020 = vmatprep.subr.bf16.mxu0 %v2019_v1  ;;  %1954 = vmatpush1.bf16.msra.mxu1 %v1953_v12  ;;  %v202_v55 = vld [vmem:[#allocation2 + $0x370] sm:$0xff]  ;;  %v211_v59 = vld [vmem:[#allocation2 + $0x3b8] sm:$0xff]  ;;  %v201_v61 = vld [vmem:[#allocation2 + $0x368] sm:$0xff]  ;;  %v1969_v1 = vpack.c.bf16 %v192_v57, %v188_v52 }
  0x52   :  { %1956 = vmatprep.subr.bf16.mxu1 %v1955_v17  ;;  %v69_v62 = vld [vmem:[%s3065_s0 + $0x78] sm:$0xff]  ;;  %v2037_v63 = vpack.c.bf16 %v202_v55, %v198_v54  ;;  %v2039_v2 = vpack.c.bf16 %v211_v59, %v207_v58  ;;  %v196_v4 = vld [vmem:[#allocation2 + $0x340] sm:$0xff]  ;;  %v205_v6 = vld [vmem:[#allocation2 + $0x388] sm:$0xff]  ;;  %v2556_v46 = vshrl.u32 %v286_v45, 7 }
  0x53   :  { %1891 = vmatmul.mubr.msk.f32.gmra.mrb[18].mxu0 %vm296_vm1, %v63_v47  ;;  %v189_v47 = vld [vmem:[#allocation2 + $0x308] sm:$0xff]  ;;  %v200_v5 = vld [vmem:[#allocation2 + $0x360] sm:$0xff]  ;;  %v72_v12 = vld [vmem:[%s3065_s0 + $0x90] sm:$0xff] }
  0x54   :  { %524 = vmatprep.mubr.f32.mxu0 %v2310_v0  ;;  %2022 = vmatpush1.bf16.msra.mxu0 %v2021_v11  ;;  %v1967_v56 = vpack.c.bf16 %v193_v48, %v189_v47  ;;  %v209_v7 = vld [vmem:[#allocation2 + $0x3a8] sm:$0xff]  ;;  %v70_v8 = vld [vmem:[%s3065_s0 + $0x80] sm:$0xff]  ;;  %v1973_v9 = vpack.c.bf16 %v200_v5, %v196_v4  ;;  %v73_v13 = vld [vmem:[%s3065_s0 + $0x98] sm:$0xff]  ;;  %v288_v47 = vsub.s32 0, %v2556_v46  ;;  %v292_v48 = vsub.s32 1, %v2556_v46 }
  0x55   :  { %2024 = vmatprep.subr.bf16.mxu0 %v2023_v14  ;;  %1958 = vmatpush1.bf16.msra.mxu1 %v1957_v25  ;;  %v71_v11 = vld [vmem:[%s3065_s0 + $0x88] sm:$0xff]  ;;  %v74_v14 = vld [vmem:[%s3065_s0 + $0xa0] sm:$0xff]  ;;  %v206_v17 = vld [vmem:[#allocation2 + $0x390] sm:$0xff] }
  0x56   :  { %1960 = vmatprep.subr.bf16.mxu1 %v1959_v30  ;;  %v204_v15 = vld [vmem:[#allocation2 + $0x380] sm:$0xff]  ;;  %v75_v18 = vld [vmem:[%s3065_s0 + $0xa8] sm:$0xff]  ;;  %v210_v20 = vld [vmem:[#allocation2 + $0x3b0] sm:$0xff] }
  0x57   :  { %1892 = vmatmul.mubr.msk.f32.gmra.mrb[20].mxu0 %vm296_vm1, %v64_v60  ;;  %v197_v60 = vld [vmem:[#allocation2 + $0x348] sm:$0xff]  ;;  %v208_v16 = vld [vmem:[#allocation2 + $0x3a0] sm:$0xff]  ;;  %v2041_v21 = vpack.c.bf16 %v210_v20, %v206_v17  ;;  %v219_v26 = vld [vmem:[#allocation2 + $0x3f8] sm:$0xff] }
  0x58   :  { %530 = vmatprep.mubr.f32.mxu0 %v2310_v0  ;;  %2026 = vmatpush1.bf16.msra.mxu0 %v2025_v24  ;;  %v1971_v3 = vpack.c.bf16 %v201_v61, %v197_v60  ;;  %v1977_v19 = vpack.c.bf16 %v208_v16, %v204_v15  ;;  %v213_v22 = vld [vmem:[#allocation2 + $0x3c8] sm:$0xff]  ;;  %v215_v24 = vld [vmem:[#allocation2 + $0x3d8] sm:$0xff]  ;;  %v216_v28 = vld [vmem:[#allocation2 + $0x3e0] sm:$0xff] }
  0x59   :  { %2028 = vmatprep.subr.bf16.mxu0 %v2027_v27  ;;  %1962 = vmatpush1.bf16.msra.mxu1 %v1961_v38  ;;  %v212_v27 = vld [vmem:[#allocation2 + $0x3c0] sm:$0xff]  ;;  %v76_v29 = vld [vmem:[%s3065_s0 + $0xb0] sm:$0xff]  ;;  %v2043_v30 = vpack.c.bf16 %v219_v26, %v215_v24  ;;  %v77_v35 = vld [vmem:[%s3065_s0 + $0xb8] sm:$0xff] }
  0x5a   :  { %1964 = vmatprep.subr.bf16.mxu1 %v1963_v43  ;;  %v1981_v31 = vpack.c.bf16 %v216_v28, %v212_v27  ;;  %v214_v32 = vld [vmem:[#allocation2 + $0x3d0] sm:$0xff]  ;;  %v81_v39 = vld [vmem:[%s3065_s0 + $0xd8] sm:$0xff]  ;;  %v83_v41 = vld [vmem:[%s3065_s0 + $0xe8] sm:$0xff] }
  0x5b   :  { %1893 = vmatmul.mubr.msk.f32.gmra.mrb[22].mxu0 %vm296_vm1, %v65_v10  ;;  %v1975_v10 = vpack.c.bf16 %v209_v7, %v205_v6  ;;  %v218_v33 = vld [vmem:[#allocation2 + $0x3f0] sm:$0xff]  ;;  %v85_v43 = vld [vmem:[%s3065_s0 + $0xf8] sm:$0xff]  ;;  %v220_v54 = vld [vmem:[#allocation4] sm:$0xff] }
  0x5c   :  { %536 = vmatprep.mubr.f32.mxu0 %v2310_v0  ;;  %2030 = vmatpush1.bf16.msra.mxu0 %v2029_v37  ;;  %v2045_v34 = vpack.c.bf16 %v218_v33, %v214_v32  ;;  %v79_v37 = vld [vmem:[%s3065_s0 + $0xc8] sm:$0xff]  ;;  %v80_v38 = vld [vmem:[%s3065_s0 + $0xd0] sm:$0xff]  ;;  %v255_v6 = vld [vmem:[#allocation4 + $0x118] sm:$0xff] }
  0x5d   :  { %2032 = vmatprep.subr.bf16.mxu0 %v2031_v40  ;;  %1966 = vmatpush1.bf16.msra.mxu1 %v1965_v51  ;;  %v82_v40 = vld [vmem:[%s3065_s0 + $0xe0] sm:$0xff]  ;;  %v84_v42 = vld [vmem:[%s3065_s0 + $0xf0] sm:$0xff]  ;;  %v221_v55 = vld [vmem:[#allocation4 + $0x8] sm:$0xff] }
  0x5e   :  { %1968 = vmatprep.subr.bf16.mxu1 %v1967_v56  ;;  %v2048_v59 = vpack.c.bf16 %v221_v55, %v220_v54  ;;  %v253_v4 = vld [vmem:[#allocation4 + $0x108] sm:$0xff]  ;;  %v254_v5 = vld [vmem:[#allocation4 + $0x110] sm:$0xff]  ;;  %v227_v27 = vld [vmem:[#allocation4 + $0x38] sm:$0xff] }
  0x5f   :  { %1894 = vmatmul.mubr.msk.f32.gmra.mrb[24].mxu0 %vm296_vm1, %v66_v23  ;;  %v217_v23 = vld [vmem:[#allocation2 + $0x3e8] sm:$0xff]  ;;  %v2580_v16 = vpack.c.bf16 %v255_v6, %v254_v5  ;;  %v226_v26 = vld [vmem:[#allocation4 + $0x30] sm:$0xff] }
  0x60   :  { %542 = vmatprep.mubr.f32.mxu0 %v2310_v0  ;;  %2034 = vmatpush1.bf16.msra.mxu0 %v2033_v50  ;;  %v1979_v25 = vpack.c.bf16 %v217_v23, %v213_v22  ;;  %v225_v15 = vld [vmem:[#allocation4 + $0x28] sm:$0xff]  ;;  %v230_v55 = vld [vmem:[#allocation4 + $0x50] sm:$0xff] }
  0x61   :  { %2036 = vmatprep.subr.bf16.mxu0 %v2035_v53  ;;  %1970 = vmatpush1.bf16.msra.mxu1 %v1969_v1  ;;  %v223_v1 = vld [vmem:[#allocation4 + $0x18] sm:$0xff]  ;;  %v233_v5 = vld [vmem:[#allocation4 + $0x68] sm:$0xff] }
  0x62   :  { %1972 = vmatprep.subr.bf16.mxu1 %v1971_v3 }
  0x63   :  { %1895 = vmatmul.mubr.msk.f32.gmra.mrb[26].mxu0 %vm296_vm1, %v67_v36  ;;  %v78_v36 = vld [vmem:[%s3065_s0 + $0xc0] sm:$0xff] }
  0x64   :  { %548 = vmatprep.mubr.f32.mxu0 %v2310_v0  ;;  %2038 = vmatpush1.bf16.msra.mxu0 %v2037_v63  ;;  %v222_v63 = vld [vmem:[#allocation4 + $0x10] sm:$0xff] }
  0x65   :  { %2040 = vmatprep.subr.bf16.mxu0 %v2039_v2  ;;  %1974 = vmatpush1.bf16.msra.mxu1 %v1973_v9  ;;  %v252_v2 = vld [vmem:[#allocation4 + $0x100] sm:$0xff] }
  0x66   :  { %1976 = vmatprep.subr.bf16.mxu1 %v1975_v10  ;;  %v2575_v7 = vpack.c.bf16 %v253_v4, %v252_v2  ;;  %v2051_v10 = vpack.c.bf16 %v223_v1, %v222_v63  ;;  %v232_v4 = vld [vmem:[#allocation4 + $0x60] sm:$0xff] }
  0x67   :  { %1896 = vmatmul.mubr.msk.f32.gmra.mrb[28].mxu0 %vm296_vm1, %v68_v49 }
  0x68   :  { %554 = vmatprep.mubr.f32.mxu0 %v2310_v0  ;;  %2042 = vmatpush1.bf16.msra.mxu0 %v2041_v21 }
  0x69   :  { %1978 = vmatpush1.bf16.msra.mxu1 %v1977_v19  ;;  %2044 = vmatprep.subr.bf16.mxu0 %v2043_v30  ;;  %v257_v19 = vld [vmem:[#allocation4 + $0x128] sm:$0xff]  ;;  %v258_v30 = vld [vmem:[#allocation4 + $0x130] sm:$0xff] }
  0x6a   :  { %1980 = vmatprep.subr.bf16.mxu1 %v1979_v25 }
  0x6b   :  { %1897 = vmatmul.mubr.msk.f32.gmra.mrb[30].mxu0 %vm296_vm1, %v69_v62 }
  0x6c   :  { %560 = vmatprep.mubr.f32.mxu0 %v2310_v0  ;;  %2046 = vmatpush1.bf16.msra.mxu0 %v2045_v34  ;;  %v2057_v34 = vpack.c.bf16 %v227_v27, %v226_v26 }
  0x6d   :  { %1982 = vmatpush1.bf16.msra.mxu1 %v1981_v31  ;;  %2095 = vmatprep.subr.bf16.mxu0 %v2311_v44  ;;  %v259_v31 = vld [vmem:[#allocation4 + $0x138] sm:$0xff] }
  0x6e   :  { %2047 = vmatprep.subr.bf16.mxu1 %v2311_v44 }
  0x6f   :  { %1898 = vmatmul.mubr.msk.f32.gmra.mrb[32].mxu0 %vm296_vm1, %v70_v8 }
  0x70   :  { %566 = vmatprep.mubr.f32.mxu0 %v2310_v0 }
  0x73   :  { %1899 = vmatmul.mubr.msk.f32.gmra.mrb[34].mxu0 %vm296_vm1, %v71_v11 }
  0x74   :  { %572 = vmatprep.mubr.f32.mxu0 %v2310_v0 }
  0x77   :  { %1900 = vmatmul.mubr.msk.f32.gmra.mrb[36].mxu0 %vm296_vm1, %v72_v12 }
  0x78   :  { %578 = vmatprep.mubr.f32.mxu0 %v2310_v0 }
  0x7b   :  { %1901 = vmatmul.mubr.msk.f32.gmra.mrb[38].mxu0 %vm296_vm1, %v73_v13 }
  0x7c   :  { %584 = vmatprep.mubr.f32.mxu0 %v2310_v0 }
  0x7f   :  { %1902 = vmatmul.mubr.msk.f32.gmra.mrb[40].mxu0 %vm296_vm1, %v74_v14  ;;  %v224_v14 = vld [vmem:[#allocation4 + $0x20] sm:$0xff] }
  0x80   :  { %590 = vmatprep.mubr.f32.mxu0 %v2310_v0  ;;  %v2054_v22 = vpack.c.bf16 %v225_v15, %v224_v14 }
  0x83   :  { %1903 = vmatmul.mubr.msk.f32.gmra.mrb[42].mxu0 %vm296_vm1, %v75_v18  ;;  %v256_v18 = vld [vmem:[#allocation4 + $0x120] sm:$0xff] }
  0x84   :  { %596 = vmatprep.mubr.f32.mxu0 %v2310_v0  ;;  %v2587_v28 = vpack.c.bf16 %v257_v19, %v256_v18  ;;  %v234_v18 = vld [vmem:[#allocation4 + $0x70] sm:$0xff]  ;;  %v235_v19 = vld [vmem:[#allocation4 + $0x78] sm:$0xff] }
  0x85   :  { %v2069_v26 = vpack.c.bf16 %v235_v19, %v234_v18  ;;  %v274_v18 = vld [vmem:[#allocation4 + $0x1b0] sm:$0xff]  ;;  %v275_v19 = vld [vmem:[#allocation4 + $0x1b8] sm:$0xff] }
  0x87   :  { %1904 = vmatmul.mubr.msk.f32.gmra.mrb[44].mxu0 %vm296_vm1, %v76_v29 }
  0x88   :  { %602 = vmatprep.mubr.f32.mxu0 %v2310_v0 }
  0x8b   :  { %1905 = vmatmul.mubr.msk.f32.gmra.mrb[46].mxu0 %vm296_vm1, %v77_v35 }
  0x8c   :  { %608 = vmatprep.mubr.f32.mxu0 %v2310_v0 }
  0x8f   :  { %1906 = vmatmul.mubr.msk.f32.gmra.mrb[48].mxu0 %vm296_vm1, %v78_v36 }
  0x90   :  { %614 = vmatprep.mubr.f32.mxu0 %v2310_v0 }
  0x93   :  { %1907 = vmatmul.mubr.msk.f32.gmra.mrb[50].mxu0 %vm296_vm1, %v79_v37 }
  0x94   :  { %620 = vmatprep.mubr.f32.mxu0 %v2310_v0 }
  0x97   :  { %1908 = vmatmul.mubr.msk.f32.gmra.mrb[52].mxu0 %vm296_vm1, %v80_v38  ;;  %v228_v38 = vld [vmem:[#allocation4 + $0x40] sm:$0xff] }
  0x98   :  { %626 = vmatprep.mubr.f32.mxu0 %v2310_v0 }
  0x9b   :  { %1909 = vmatmul.mubr.msk.f32.gmra.mrb[54].mxu0 %vm296_vm1, %v81_v39  ;;  %v229_v39 = vld [vmem:[#allocation4 + $0x48] sm:$0xff] }
  0x9c   :  { %632 = vmatprep.mubr.f32.mxu0 %v2310_v0 }
  0x9f   :  { %1910 = vmatmul.mubr.msk.f32.gmra.mrb[56].mxu0 %vm296_vm1, %v82_v40  ;;  %v2594_v40 = vpack.c.bf16 %v259_v31, %v258_v30  ;;  %v236_v31 = vld [vmem:[#allocation4 + $0x80] sm:$0xff] }
  0xa0   :  { %638 = vmatprep.mubr.f32.mxu0 %v2310_v0 }
  0xa3   :  { %1911 = vmatmul.mubr.msk.f32.gmra.mrb[58].mxu0 %vm296_vm1, %v83_v41 }
  0xa4   :  { %644 = vmatprep.mubr.f32.mxu0 %v2310_v0 }
  0xa7   :  { %1912 = vmatmul.mubr.msk.f32.gmra.mrb[60].mxu0 %vm296_vm1, %v84_v42  ;;  %v260_v42 = vld [vmem:[#allocation4 + $0x140] sm:$0xff] }
  0xa8   :  { %650 = vmatprep.mubr.f32.mxu0 %v2310_v0  ;;  %v284_v0 = vld [vmem:[%s3067_s2] sm:$0x3] }
  0xa9   :  { %v2565_v49 = vrot.slane %v284_v0, %v288_v47  ;;  %v2569_v50 = vrot.slane %v284_v0, %v292_v48 }
  0xab   :  { %1913 = vmatmul.mubr.msk.f32.gmra.mrb[62].mxu0 %vm296_vm1, %v85_v43  ;;  %v261_v43 = vld [vmem:[#allocation4 + $0x148] sm:$0xff] }
 0x102   :  { %v466_v51 = vpop.f32.mrb[0].mxu0 }
 0x103   :  { %v467_v52 = vadd.f32 %v466_v51, %v2565_v49  ;;  %v468_v53 = vpop.f32.mrb[1].mxu0  ;;  %v2060_v51 = vpack.c.bf16 %v229_v39, %v228_v38 }
 0x104   :  { %v469_v56 = vadd.f32 %v468_v53, %v2569_v50 }
 0x105   :  { %v657_v60 = vmax.f32 %v467_v52, 0.0 }
 0x106   :  { %v658_v57 = vmax.f32 %v469_v56, 0.0  ;;  %v472_v58 = vpop.f32.mrb[2].mxu0  ;;  %v231_v56 = vld [vmem:[#allocation4 + $0x58] sm:$0xff] }
 0x107   :  { %v473_v61 = vadd.f32 %v472_v58, %v2565_v49  ;;  %v474_v62 = vpop.f32.mrb[3].mxu0  ;;  %v2063_v63 = vpack.c.bf16 %v231_v56, %v230_v55 }
 0x108   :  { %v475_v3 = vadd.f32 %v474_v62, %v2569_v50  ;;  %807 = vmatprep.mubr.f32.mxu1 %v658_v57  ;;  %1064 = vmatprep.mubr.f32.mxu0 %v658_v57  ;;  %v2601_v57 = vpack.c.bf16 %v261_v43, %v260_v42 }
 0x109   :  { %808 = vmatmul.mubr.f32.vlgmr.msra.gmra.mrb[0].mxu1 %v657_v60  ;;  %1065 = vmatmul.mubr.f32.vlgmr.msra.gmra.mrb[64].mxu0 %v657_v60  ;;  %v659_v11 = vmax.f32 %v473_v61, 0.0  ;;  %v263_v60 = vld [vmem:[#allocation4 + $0x158] sm:$0xff] }
 0x10a   :  { %v660_v8 = vmax.f32 %v475_v3, 0.0  ;;  %v478_v9 = vpop.f32.mrb[4].mxu0  ;;  %2049 = vmatpush1.bf16.msra.mxu1 %v2048_v59  ;;  %2097 = vmatpush1.bf16.msra.mxu0 %v2575_v7  ;;  %v262_v59 = vld [vmem:[#allocation4 + $0x150] sm:$0xff] }
 0x10b   :  { %v479_v12 = vadd.f32 %v478_v9, %v2565_v49  ;;  %v480_v13 = vpop.f32.mrb[5].mxu0  ;;  %2050 = vmatprep.subr.bf16.mxu1 %v2311_v44  ;;  %2098 = vmatprep.subr.bf16.mxu0 %v2311_v44  ;;  %v2608_v6 = vpack.c.bf16 %v263_v60, %v262_v59  ;;  %v264_v9 = vld [vmem:[#allocation4 + $0x160] sm:$0xff] }
 0x10c   :  { %v481_v17 = vadd.f32 %v480_v13, %v2569_v50  ;;  %813 = vmatprep.mubr.f32.mxu1 %v660_v8  ;;  %1070 = vmatprep.mubr.f32.mxu0 %v660_v8  ;;  %v2066_v13 = vpack.c.bf16 %v233_v5, %v232_v4  ;;  %v273_v4 = vld [vmem:[#allocation4 + $0x1a8] sm:$0xff] }
 0x10d   :  { %814 = vmatmul.mubr.f32.gmra.mrb[2].mxu1 %v659_v11  ;;  %1071 = vmatmul.mubr.f32.gmra.mrb[66].mxu0 %v659_v11  ;;  %v661_v23 = vmax.f32 %v479_v12, 0.0 }
 0x10e   :  { %v662_v20 = vmax.f32 %v481_v17, 0.0  ;;  %v484_v21 = vpop.f32.mrb[6].mxu0  ;;  %2052 = vmatpush1.bf16.msra.mxu1 %v2051_v10  ;;  %2100 = vmatpush1.bf16.msra.mxu0 %v2580_v16  ;;  %v265_v10 = vld [vmem:[#allocation4 + $0x168] sm:$0xff] }
 0x10f   :  { %v485_v24 = vadd.f32 %v484_v21, %v2565_v49  ;;  %v486_v25 = vpop.f32.mrb[7].mxu0  ;;  %2053 = vmatprep.subr.bf16.mxu1 %v2311_v44  ;;  %2101 = vmatprep.subr.bf16.mxu0 %v2311_v44 }
 0x110   :  { %v487_v29 = vadd.f32 %v486_v25, %v2569_v50  ;;  %819 = vmatprep.mubr.f32.mxu1 %v662_v20  ;;  %1076 = vmatprep.mubr.f32.mxu0 %v662_v20  ;;  %v2615_v20 = vpack.c.bf16 %v265_v10, %v264_v9 }
 0x111   :  { %820 = vmatmul.mubr.f32.gmra.mrb[4].mxu1 %v661_v23  ;;  %1077 = vmatmul.mubr.f32.gmra.mrb[68].mxu0 %v661_v23  ;;  %v663_v35 = vmax.f32 %v485_v24, 0.0  ;;  %v267_v23 = vld [vmem:[#allocation4 + $0x178] sm:$0xff] }
 0x112   :  { %v664_v32 = vmax.f32 %v487_v29, 0.0  ;;  %v490_v33 = vpop.f32.mrb[8].mxu0  ;;  %2055 = vmatpush1.bf16.msra.mxu1 %v2054_v22  ;;  %2103 = vmatpush1.bf16.msra.mxu0 %v2587_v28  ;;  %v266_v22 = vld [vmem:[#allocation4 + $0x170] sm:$0xff] }
 0x113   :  { %v491_v36 = vadd.f32 %v490_v33, %v2565_v49  ;;  %v492_v37 = vpop.f32.mrb[9].mxu0  ;;  %2056 = vmatprep.subr.bf16.mxu1 %v2311_v44  ;;  %2104 = vmatprep.subr.bf16.mxu0 %v2311_v44  ;;  %v2622_v33 = vpack.c.bf16 %v267_v23, %v266_v22 }
 0x114   :  { %v493_v41 = vadd.f32 %v492_v37, %v2569_v50  ;;  %825 = vmatprep.mubr.f32.mxu1 %v664_v32  ;;  %1082 = vmatprep.mubr.f32.mxu0 %v664_v32  ;;  %v237_v32 = vld [vmem:[#allocation4 + $0x88] sm:$0xff] }
 0x115   :  { %826 = vmatmul.mubr.f32.gmra.mrb[6].mxu1 %v663_v35  ;;  %1083 = vmatmul.mubr.f32.gmra.mrb[70].mxu0 %v663_v35  ;;  %v665_v52 = vmax.f32 %v491_v36, 0.0  ;;  %v268_v35 = vld [vmem:[#allocation4 + $0x180] sm:$0xff]  ;;  %v269_v36 = vld [vmem:[#allocation4 + $0x188] sm:$0xff]  ;;  %v2072_v39 = vpack.c.bf16 %v237_v32, %v236_v31 }
 0x116   :  { %v666_v45 = vmax.f32 %v493_v41, 0.0  ;;  %v496_v0 = vpop.f32.mrb[10].mxu0  ;;  %2058 = vmatpush1.bf16.msra.mxu1 %v2057_v34  ;;  %2106 = vmatpush1.bf16.msra.mxu0 %v2594_v40  ;;  %v276_v32 = vld [vmem:[#allocation4 + $0x1c0] sm:$0xff] }
 0x117   :  { %v497_v53 = vadd.f32 %v496_v0, %v2565_v49  ;;  %v498_v54 = vpop.f32.mrb[11].mxu0  ;;  %2059 = vmatprep.subr.bf16.mxu1 %v2311_v44  ;;  %2107 = vmatprep.subr.bf16.mxu0 %v2311_v44  ;;  %v239_v0 = vld [vmem:[#allocation4 + $0x98] sm:$0xff] }
 0x118   :  { %v499_v58 = vadd.f32 %v498_v54, %v2569_v50  ;;  %831 = vmatprep.mubr.f32.mxu1 %v666_v45  ;;  %1088 = vmatprep.mubr.f32.mxu0 %v666_v45  ;;  %v238_v45 = vld [vmem:[#allocation4 + $0x90] sm:$0xff]  ;;  %v271_v54 = vld [vmem:[#allocation4 + $0x198] sm:$0xff] }
 0x119   :  { %832 = vmatmul.mubr.f32.gmra.mrb[8].mxu1 %v665_v52  ;;  %1089 = vmatmul.mubr.f32.gmra.mrb[72].mxu0 %v665_v52  ;;  %v667_v1 = vmax.f32 %v497_v53, 0.0  ;;  %v270_v53 = vld [vmem:[#allocation4 + $0x190] sm:$0xff] }
 0x11a   :  { %v668_v61 = vmax.f32 %v499_v58, 0.0  ;;  %v502_v62 = vpop.f32.mrb[12].mxu0  ;;  %2061 = vmatpush1.bf16.msra.mxu1 %v2060_v51  ;;  %2109 = vmatpush1.bf16.msra.mxu0 %v2601_v57  ;;  %v2629_v51 = vpack.c.bf16 %v269_v36, %v268_v35  ;;  %v2075_v58 = vpack.c.bf16 %v239_v0, %v238_v45 }
 0x11b   :  { %v503_v2 = vadd.f32 %v502_v62, %v2565_v49  ;;  %v504_v3 = vpop.f32.mrb[13].mxu0  ;;  %2062 = vmatprep.subr.bf16.mxu1 %v2311_v44  ;;  %2110 = vmatprep.subr.bf16.mxu0 %v2311_v44  ;;  %v240_v62 = vld [vmem:[#allocation4 + $0xa0] sm:$0xff] }
 0x11c   :  { %v505_v8 = vadd.f32 %v504_v3, %v2569_v50  ;;  %837 = vmatprep.mubr.f32.mxu1 %v668_v61  ;;  %1094 = vmatprep.mubr.f32.mxu0 %v668_v61  ;;  %v272_v3 = vld [vmem:[#allocation4 + $0x1a0] sm:$0xff] }
 0x11d   :  { %838 = vmatmul.mubr.f32.gmra.mrb[10].mxu1 %v667_v1  ;;  %1095 = vmatmul.mubr.f32.gmra.mrb[74].mxu0 %v667_v1  ;;  %v669_v14 = vmax.f32 %v503_v2, 0.0  ;;  %v2636_v1 = vpack.c.bf16 %v271_v54, %v270_v53  ;;  %v279_v53 = vld [vmem:[#allocation4 + $0x1d8] sm:$0xff] }
 0x11e   :  { %v670_v11 = vmax.f32 %v505_v8, 0.0  ;;  %v508_v12 = vpop.f32.mrb[14].mxu0  ;;  %2064 = vmatpush1.bf16.msra.mxu1 %v2063_v63  ;;  %2112 = vmatpush1.bf16.msra.mxu0 %v2608_v6  ;;  %v241_v63 = vld [vmem:[#allocation4 + $0xa8] sm:$0xff] }
 0x11f   :  { %v509_v15 = vadd.f32 %v508_v12, %v2565_v49  ;;  %v510_v17 = vpop.f32.mrb[15].mxu0  ;;  %2065 = vmatprep.subr.bf16.mxu1 %v2311_v44  ;;  %2113 = vmatprep.subr.bf16.mxu0 %v2311_v44  ;;  %v2078_v9 = vpack.c.bf16 %v241_v63, %v240_v62  ;;  %v249_v62 = vld [vmem:[#allocation4 + $0xe8] sm:$0xff] }
 0x120   :  { %v511_v21 = vadd.f32 %v510_v17, %v2569_v50  ;;  %843 = vmatprep.mubr.f32.mxu1 %v670_v11  ;;  %1100 = vmatprep.mubr.f32.mxu0 %v670_v11 }
 0x121   :  { %844 = vmatmul.mubr.f32.gmra.mrb[12].mxu1 %v669_v14  ;;  %1101 = vmatmul.mubr.f32.gmra.mrb[76].mxu0 %v669_v14  ;;  %v671_v27 = vmax.f32 %v509_v15, 0.0  ;;  %v243_v14 = vld [vmem:[#allocation4 + $0xb8] sm:$0xff]  ;;  %v2643_v15 = vpack.c.bf16 %v273_v4, %v272_v3 }
 0x122   :  { %v672_v24 = vmax.f32 %v511_v21, 0.0  ;;  %v514_v25 = vpop.f32.mrb[16].mxu0  ;;  %2067 = vmatpush1.bf16.msra.mxu1 %v2066_v13  ;;  %2115 = vmatpush1.bf16.msra.mxu0 %v2615_v20  ;;  %v242_v13 = vld [vmem:[#allocation4 + $0xb0] sm:$0xff] }
 0x123   :  { %v515_v29 = vadd.f32 %v514_v25, %v2565_v49  ;;  %v516_v30 = vpop.f32.mrb[17].mxu0  ;;  %2068 = vmatprep.subr.bf16.mxu1 %v2311_v44  ;;  %2116 = vmatprep.subr.bf16.mxu0 %v2311_v44  ;;  %v2081_v23 = vpack.c.bf16 %v243_v14, %v242_v13 }
 0x124   :  { %v517_v34 = vadd.f32 %v516_v30, %v2569_v50  ;;  %849 = vmatprep.mubr.f32.mxu1 %v672_v24  ;;  %1106 = vmatprep.mubr.f32.mxu0 %v672_v24  ;;  %v2650_v30 = vpack.c.bf16 %v275_v19, %v274_v18 }
 0x125   :  { %850 = vmatmul.mubr.f32.gmra.mrb[14].mxu1 %v671_v27  ;;  %1107 = vmatmul.mubr.f32.gmra.mrb[78].mxu0 %v671_v27  ;;  %v673_v41 = vmax.f32 %v515_v29, 0.0  ;;  %v244_v27 = vld [vmem:[#allocation4 + $0xc0] sm:$0xff]  ;;  %v245_v29 = vld [vmem:[#allocation4 + $0xc8] sm:$0xff] }
 0x126   :  { %v674_v37 = vmax.f32 %v517_v34, 0.0  ;;  %v520_v38 = vpop.f32.mrb[18].mxu0  ;;  %2070 = vmatpush1.bf16.msra.mxu1 %v2069_v26  ;;  %2118 = vmatpush1.bf16.msra.mxu0 %v2622_v33  ;;  %v277_v34 = vld [vmem:[#allocation4 + $0x1c8] sm:$0xff] }
 0x127   :  { %v521_v42 = vadd.f32 %v520_v38, %v2565_v49  ;;  %v522_v43 = vpop.f32.mrb[19].mxu0  ;;  %2071 = vmatprep.subr.bf16.mxu1 %v2311_v44  ;;  %2119 = vmatprep.subr.bf16.mxu0 %v2311_v44  ;;  %v2657_v45 = vpack.c.bf16 %v277_v34, %v276_v32 }
 0x128   :  { %v523_v52 = vadd.f32 %v522_v43, %v2569_v50  ;;  %855 = vmatprep.mubr.f32.mxu1 %v674_v37  ;;  %1112 = vmatprep.mubr.f32.mxu0 %v674_v37  ;;  %v2084_v37 = vpack.c.bf16 %v245_v29, %v244_v27  ;;  %v247_v43 = vld [vmem:[#allocation4 + $0xd8] sm:$0xff] }
 0x129   :  { %856 = vmatmul.mubr.f32.gmra.mrb[16].mxu1 %v673_v41  ;;  %1113 = vmatmul.mubr.f32.gmra.mrb[80].mxu0 %v673_v41  ;;  %v675_v59 = vmax.f32 %v521_v42, 0.0  ;;  %v246_v42 = vld [vmem:[#allocation4 + $0xd0] sm:$0xff] }
 0x12a   :  { %v676_v55 = vmax.f32 %v523_v52, 0.0  ;;  %v526_v56 = vpop.f32.mrb[20].mxu0  ;;  %2073 = vmatpush1.bf16.msra.mxu1 %v2072_v39  ;;  %2121 = vmatpush1.bf16.msra.mxu0 %v2629_v51  ;;  %v278_v52 = vld [vmem:[#allocation4 + $0x1d0] sm:$0xff] }
 0x12b   :  { %v527_v60 = vadd.f32 %v526_v56, %v2565_v49  ;;  %v528_v61 = vpop.f32.mrb[21].mxu0  ;;  %2074 = vmatprep.subr.bf16.mxu1 %v2311_v44  ;;  %2122 = vmatprep.subr.bf16.mxu0 %v2311_v44  ;;  %v2087_v56 = vpack.c.bf16 %v247_v43, %v246_v42  ;;  %v2664_v63 = vpack.c.bf16 %v279_v53, %v278_v52 }
 0x12c   :  { %v529_v2 = vadd.f32 %v528_v61, %v2569_v50  ;;  %861 = vmatprep.mubr.f32.mxu1 %v676_v55  ;;  %1118 = vmatprep.mubr.f32.mxu0 %v676_v55  ;;  %v248_v61 = vld [vmem:[#allocation4 + $0xe0] sm:$0xff] }
 0x12d   :  { %862 = vmatmul.mubr.f32.gmra.mrb[18].mxu1 %v675_v59  ;;  %1119 = vmatmul.mubr.f32.gmra.mrb[82].mxu0 %v675_v59  ;;  %v677_v10 = vmax.f32 %v527_v60, 0.0 }
 0x12e   :  { %v678_v5 = vmax.f32 %v529_v2, 0.0  ;;  %v532_v8 = vpop.f32.mrb[22].mxu0  ;;  %2076 = vmatpush1.bf16.msra.mxu1 %v2075_v58  ;;  %2124 = vmatpush1.bf16.msra.mxu0 %v2636_v1 }
 0x12f   :  { %v533_v11 = vadd.f32 %v532_v8, %v2565_v49  ;;  %v534_v12 = vpop.f32.mrb[23].mxu0  ;;  %2077 = vmatprep.subr.bf16.mxu1 %v2311_v44  ;;  %2125 = vmatprep.subr.bf16.mxu0 %v2311_v44 }
 0x130   :  { %v535_v17 = vadd.f32 %v534_v12, %v2569_v50  ;;  %867 = vmatprep.mubr.f32.mxu1 %v678_v5  ;;  %1124 = vmatprep.mubr.f32.mxu0 %v678_v5  ;;  %v2090_v5 = vpack.c.bf16 %v249_v62, %v248_v61  ;;  %v251_v12 = vld [vmem:[#allocation4 + $0xf8] sm:$0xff] }
 0x131   :  { %868 = vmatmul.mubr.f32.gmra.mrb[20].mxu1 %v677_v10  ;;  %1125 = vmatmul.mubr.f32.gmra.mrb[84].mxu0 %v677_v10  ;;  %v679_v24 = vmax.f32 %v533_v11, 0.0  ;;  %v250_v11 = vld [vmem:[#allocation4 + $0xf0] sm:$0xff] }
 0x132   :  { %v680_v21 = vmax.f32 %v535_v17, 0.0  ;;  %v538_v22 = vpop.f32.mrb[24].mxu0  ;;  %2079 = vmatpush1.bf16.msra.mxu1 %v2078_v9  ;;  %2127 = vmatpush1.bf16.msra.mxu0 %v2643_v15  ;;  %v2093_v18 = vpack.c.bf16 %v251_v12, %v250_v11 }
 0x133   :  { %v539_v25 = vadd.f32 %v538_v22, %v2565_v49  ;;  %v540_v26 = vpop.f32.mrb[25].mxu0  ;;  %2080 = vmatprep.subr.bf16.mxu1 %v2311_v44  ;;  %2128 = vmatprep.subr.bf16.mxu0 %v2311_v44 }
 0x134   :  { %v541_v31 = vadd.f32 %v540_v26, %v2569_v50  ;;  %873 = vmatprep.mubr.f32.mxu1 %v680_v21  ;;  %1130 = vmatprep.mubr.f32.mxu0 %v680_v21 }
 0x135   :  { %874 = vmatmul.mubr.f32.gmra.mrb[22].mxu1 %v679_v24  ;;  %1131 = vmatmul.mubr.f32.gmra.mrb[86].mxu0 %v679_v24  ;;  %v681_v38 = vmax.f32 %v539_v25, 0.0 }
 0x136   :  { %v682_v35 = vmax.f32 %v541_v31, 0.0  ;;  %v544_v36 = vpop.f32.mrb[26].mxu0  ;;  %2082 = vmatpush1.bf16.msra.mxu1 %v2081_v23  ;;  %2130 = vmatpush1.bf16.msra.mxu0 %v2650_v30 }
 0x137   :  { %v545_v39 = vadd.f32 %v544_v36, %v2565_v49  ;;  %v546_v41 = vpop.f32.mrb[27].mxu0  ;;  %2083 = vmatprep.subr.bf16.mxu1 %v2311_v44  ;;  %2131 = vmatprep.subr.bf16.mxu0 %v2311_v44 }
 0x138   :  { %v547_v0 = vadd.f32 %v546_v41, %v2569_v50  ;;  %879 = vmatprep.mubr.f32.mxu1 %v682_v35  ;;  %1136 = vmatprep.mubr.f32.mxu0 %v682_v35 }
 0x139   :  { %880 = vmatmul.mubr.f32.gmra.mrb[24].mxu1 %v681_v38  ;;  %1137 = vmatmul.mubr.f32.gmra.mrb[88].mxu0 %v681_v38  ;;  %v683_v58 = vmax.f32 %v545_v39, 0.0 }
 0x13a   :  { %v684_v54 = vmax.f32 %v547_v0, 0.0  ;;  %v550_v55 = vpop.f32.mrb[28].mxu0  ;;  %2085 = vmatpush1.bf16.msra.mxu1 %v2084_v37  ;;  %2133 = vmatpush1.bf16.msra.mxu0 %v2657_v45 }
 0x13b   :  { %v551_v59 = vadd.f32 %v550_v55, %v2565_v49  ;;  %v552_v60 = vpop.f32.mrb[29].mxu0  ;;  %2086 = vmatprep.subr.bf16.mxu1 %v2311_v44  ;;  %2134 = vmatprep.subr.bf16.mxu0 %v2311_v44 }
 0x13c   :  { %v553_v2 = vadd.f32 %v552_v60, %v2569_v50  ;;  %885 = vmatprep.mubr.f32.mxu1 %v684_v54  ;;  %1142 = vmatprep.mubr.f32.mxu0 %v684_v54 }
 0x13d   :  { %886 = vmatmul.mubr.f32.gmra.mrb[26].mxu1 %v683_v58  ;;  %1143 = vmatmul.mubr.f32.gmra.mrb[90].mxu0 %v683_v58  ;;  %v685_v8 = vmax.f32 %v551_v59, 0.0 }
 0x13e   :  { %v686_v3 = vmax.f32 %v553_v2, 0.0  ;;  %v556_v4 = vpop.f32.mrb[30].mxu0  ;;  %2088 = vmatpush1.bf16.msra.mxu1 %v2087_v56  ;;  %2136 = vmatpush1.bf16.msra.mxu0 %v2664_v63 }
 0x13f   :  { %v557_v9 = vadd.f32 %v556_v4, %v2565_v49  ;;  %v558_v10 = vpop.f32.mrb[31].mxu0  ;;  %2089 = vmatprep.subr.bf16.mxu1 %v2311_v44  ;;  %2137 = vmatprep.subr.bf16.mxu0 %v2311_v44 }
 0x140   :  { %v559_v13 = vadd.f32 %v558_v10, %v2569_v50  ;;  %891 = vmatprep.mubr.f32.mxu1 %v686_v3  ;;  %1148 = vmatprep.mubr.f32.mxu0 %v686_v3 }
 0x141   :  { %892 = vmatmul.mubr.f32.gmra.mrb[28].mxu1 %v685_v8  ;;  %1149 = vmatmul.mubr.f32.gmra.mrb[92].mxu0 %v685_v8  ;;  %v687_v19 = vmax.f32 %v557_v9, 0.0  ;;  %v281_v8 = vld [vmem:[#allocation4 + $0x1e8] sm:$0xff] }
 0x142   :  { %v688_v14 = vmax.f32 %v559_v13, 0.0  ;;  %v562_v17 = vpop.f32.mrb[32].mxu0  ;;  %2091 = vmatpush1.bf16.msra.mxu1 %v2090_v5  ;;  %v280_v5 = vld [vmem:[#allocation4 + $0x1e0] sm:$0xff] }
 0x143   :  { %v563_v21 = vadd.f32 %v562_v17, %v2565_v49  ;;  %v564_v22 = vpop.f32.mrb[33].mxu0  ;;  %2092 = vmatprep.subr.bf16.mxu1 %v2311_v44  ;;  %v2687_v11 = vpack.c.bf16 %v281_v8, %v280_v5 }
 0x144   :  { %v565_v23 = vadd.f32 %v564_v22, %v2569_v50  ;;  %897 = vmatprep.mubr.f32.mxu1 %v688_v14  ;;  %1154 = vmatprep.mubr.f32.mxu0 %v688_v14 }
 0x145   :  { %898 = vmatmul.mubr.f32.gmra.mrb[30].mxu1 %v687_v19  ;;  %1155 = vmatmul.mubr.f32.gmra.mrb[94].mxu0 %v687_v19  ;;  %v689_v26 = vmax.f32 %v563_v21, 0.0  ;;  %v283_v19 = vld [vmem:[#allocation4 + $0x1f8] sm:$0xff] }
 0x146   :  { %v690_v24 = vmax.f32 %v565_v23, 0.0  ;;  %v568_v25 = vpop.f32.mrb[34].mxu0  ;;  %2094 = vmatpush1.bf16.msra.mxu1 %v2093_v18  ;;  %v282_v18 = vld [vmem:[#allocation4 + $0x1f0] sm:$0xff]  ;;  %2139 = vmatpush1.bf16.msra.mxu0 %v2687_v11 }
 0x147   :  { %v569_v27 = vadd.f32 %v568_v25, %v2565_v49  ;;  %v570_v29 = vpop.f32.mrb[35].mxu0  ;;  %2143 = vmatprep.subr.bf16.mxu1 %v2311_v44  ;;  %v2692_v23 = vpack.c.bf16 %v283_v19, %v282_v18  ;;  %2140 = vmatprep.subr.bf16.mxu0 %v2311_v44 }
 0x148   :  { %v571_v31 = vadd.f32 %v570_v29, %v2569_v50  ;;  %903 = vmatprep.mubr.f32.mxu1 %v690_v24  ;;  %1160 = vmatprep.mubr.f32.mxu0 %v690_v24 }
 0x149   :  { %904 = vmatmul.mubr.f32.gmra.mrb[32].mxu1 %v689_v26  ;;  %1161 = vmatmul.mubr.f32.gmra.mrb[96].mxu0 %v689_v26  ;;  %v691_v35 = vmax.f32 %v569_v27, 0.0 }
 0x14a   :  { %v692_v32 = vmax.f32 %v571_v31, 0.0  ;;  %v574_v34 = vpop.f32.mrb[36].mxu0  ;;  %2142 = vmatpush1.bf16.msra.mxu0 %v2692_v23 }
 0x14b   :  { %v575_v36 = vadd.f32 %v574_v34, %v2565_v49  ;;  %v576_v37 = vpop.f32.mrb[37].mxu0 }
 0x14c   :  { %v577_v38 = vadd.f32 %v576_v37, %v2569_v50  ;;  %909 = vmatprep.mubr.f32.mxu1 %v692_v32  ;;  %1166 = vmatprep.mubr.f32.mxu0 %v692_v32 }
 0x14d   :  { %910 = vmatmul.mubr.f32.gmra.mrb[34].mxu1 %v691_v35  ;;  %1167 = vmatmul.mubr.f32.gmra.mrb[98].mxu0 %v691_v35  ;;  %v693_v42 = vmax.f32 %v575_v36, 0.0 }
 0x14e   :  { %v694_v39 = vmax.f32 %v577_v38, 0.0  ;;  %v580_v41 = vpop.f32.mrb[38].mxu0 }
 0x14f   :  { %v581_v43 = vadd.f32 %v580_v41, %v2565_v49  ;;  %v582_v0 = vpop.f32.mrb[39].mxu0 }
 0x150   :  { %v583_v52 = vadd.f32 %v582_v0, %v2569_v50  ;;  %915 = vmatprep.mubr.f32.mxu1 %v694_v39  ;;  %1172 = vmatprep.mubr.f32.mxu0 %v694_v39 }
 0x151   :  { %916 = vmatmul.mubr.f32.gmra.mrb[36].mxu1 %v693_v42  ;;  %1173 = vmatmul.mubr.f32.gmra.mrb[100].mxu0 %v693_v42  ;;  %v695_v55 = vmax.f32 %v581_v43, 0.0 }
 0x152   :  { %v696_v53 = vmax.f32 %v583_v52, 0.0  ;;  %v586_v54 = vpop.f32.mrb[40].mxu0 }
 0x153   :  { %v587_v56 = vadd.f32 %v586_v54, %v2565_v49  ;;  %v588_v58 = vpop.f32.mrb[41].mxu0 }
 0x154   :  { %v589_v59 = vadd.f32 %v588_v58, %v2569_v50  ;;  %921 = vmatprep.mubr.f32.mxu1 %v696_v53  ;;  %1178 = vmatprep.mubr.f32.mxu0 %v696_v53 }
 0x155   :  { %922 = vmatmul.mubr.f32.gmra.mrb[38].mxu1 %v695_v55  ;;  %1179 = vmatmul.mubr.f32.gmra.mrb[102].mxu0 %v695_v55  ;;  %v697_v62 = vmax.f32 %v587_v56, 0.0 }
 0x156   :  { %v698_v60 = vmax.f32 %v589_v59, 0.0  ;;  %v592_v61 = vpop.f32.mrb[42].mxu0 }
 0x157   :  { %v593_v2 = vadd.f32 %v592_v61, %v2565_v49  ;;  %v594_v3 = vpop.f32.mrb[43].mxu0 }
 0x158   :  { %v595_v4 = vadd.f32 %v594_v3, %v2569_v50  ;;  %927 = vmatprep.mubr.f32.mxu1 %v698_v60  ;;  %1184 = vmatprep.mubr.f32.mxu0 %v698_v60 }
 0x159   :  { %928 = vmatmul.mubr.f32.gmra.mrb[40].mxu1 %v697_v62  ;;  %1185 = vmatmul.mubr.f32.gmra.mrb[104].mxu0 %v697_v62  ;;  %v699_v12 = vmax.f32 %v593_v2, 0.0 }
 0x15a   :  { %v700_v9 = vmax.f32 %v595_v4, 0.0  ;;  %v598_v10 = vpop.f32.mrb[44].mxu0 }
 0x15b   :  { %v599_v13 = vadd.f32 %v598_v10, %v2565_v49  ;;  %v600_v14 = vpop.f32.mrb[45].mxu0 }
 0x15c   :  { %v601_v17 = vadd.f32 %v600_v14, %v2569_v50  ;;  %933 = vmatprep.mubr.f32.mxu1 %v700_v9  ;;  %1190 = vmatprep.mubr.f32.mxu0 %v700_v9 }
 0x15d   :  { %934 = vmatmul.mubr.f32.gmra.mrb[42].mxu1 %v699_v12  ;;  %1191 = vmatmul.mubr.f32.gmra.mrb[106].mxu0 %v699_v12  ;;  %v701_v24 = vmax.f32 %v599_v13, 0.0 }
 0x15e   :  { %v702_v21 = vmax.f32 %v601_v17, 0.0  ;;  %v604_v22 = vpop.f32.mrb[46].mxu0 }
 0x15f   :  { %v605_v25 = vadd.f32 %v604_v22, %v2565_v49  ;;  %v606_v26 = vpop.f32.mrb[47].mxu0 }
 0x160   :  { %v607_v27 = vadd.f32 %v606_v26, %v2569_v50  ;;  %939 = vmatprep.mubr.f32.mxu1 %v702_v21  ;;  %1196 = vmatprep.mubr.f32.mxu0 %v702_v21 }
 0x161   :  { %940 = vmatmul.mubr.f32.gmra.mrb[44].mxu1 %v701_v24  ;;  %1197 = vmatmul.mubr.f32.gmra.mrb[108].mxu0 %v701_v24  ;;  %v703_v32 = vmax.f32 %v605_v25, 0.0 }
 0x162   :  { %v704_v29 = vmax.f32 %v607_v27, 0.0  ;;  %v610_v31 = vpop.f32.mrb[48].mxu0 }
 0x163   :  { %v611_v34 = vadd.f32 %v610_v31, %v2565_v49  ;;  %v612_v35 = vpop.f32.mrb[49].mxu0 }
 0x164   :  { %v613_v36 = vadd.f32 %v612_v35, %v2569_v50  ;;  %945 = vmatprep.mubr.f32.mxu1 %v704_v29  ;;  %1202 = vmatprep.mubr.f32.mxu0 %v704_v29 }
 0x165   :  { %946 = vmatmul.mubr.f32.gmra.mrb[46].mxu1 %v703_v32  ;;  %1203 = vmatmul.mubr.f32.gmra.mrb[110].mxu0 %v703_v32  ;;  %v705_v39 = vmax.f32 %v611_v34, 0.0 }
 0x166   :  { %v706_v37 = vmax.f32 %v613_v36, 0.0  ;;  %v616_v38 = vpop.f32.mrb[50].mxu0 }
 0x167   :  { %v617_v41 = vadd.f32 %v616_v38, %v2565_v49  ;;  %v618_v42 = vpop.f32.mrb[51].mxu0 }
 0x168   :  { %v619_v43 = vadd.f32 %v618_v42, %v2569_v50  ;;  %951 = vmatprep.mubr.f32.mxu1 %v706_v37  ;;  %1208 = vmatprep.mubr.f32.mxu0 %v706_v37 }
 0x169   :  { %952 = vmatmul.mubr.f32.gmra.mrb[48].mxu1 %v705_v39  ;;  %1209 = vmatmul.mubr.f32.gmra.mrb[112].mxu0 %v705_v39  ;;  %v707_v53 = vmax.f32 %v617_v41, 0.0  ;;  %v733_v39 = vsub.s32 2, %v2556_v46  ;;  %v721_v41 = vld [vmem:[%s3069_s4] sm:$0xf] }
 0x16a   :  { %v708_v0 = vmax.f32 %v619_v43, 0.0  ;;  %v622_v52 = vpop.f32.mrb[52].mxu0  ;;  %v2727_v43 = vrot.slane %v721_v41, %v292_v48 }
 0x16b   :  { %v623_v54 = vadd.f32 %v622_v52, %v2565_v49  ;;  %v624_v55 = vpop.f32.mrb[53].mxu0  ;;  %v2723_v42 = vrot.slane %v721_v41, %v733_v39 }
 0x16c   :  { %v625_v56 = vadd.f32 %v624_v55, %v2569_v50  ;;  %957 = vmatprep.mubr.f32.mxu1 %v708_v0  ;;  %1214 = vmatprep.mubr.f32.mxu0 %v708_v0 }
 0x16d   :  { %958 = vmatmul.mubr.f32.gmra.mrb[50].mxu1 %v707_v53  ;;  %1215 = vmatmul.mubr.f32.gmra.mrb[114].mxu0 %v707_v53  ;;  %v709_v60 = vmax.f32 %v623_v54, 0.0 }
 0x16e   :  { %v710_v58 = vmax.f32 %v625_v56, 0.0  ;;  %v628_v59 = vpop.f32.mrb[54].mxu0 }
 0x16f   :  { %v629_v61 = vadd.f32 %v628_v59, %v2565_v49  ;;  %v630_v62 = vpop.f32.mrb[55].mxu0 }
 0x170   :  { %v631_v2 = vadd.f32 %v630_v62, %v2569_v50  ;;  %963 = vmatprep.mubr.f32.mxu1 %v710_v58  ;;  %1220 = vmatprep.mubr.f32.mxu0 %v710_v58 }
 0x171   :  { %964 = vmatmul.mubr.f32.gmra.mrb[52].mxu1 %v709_v60  ;;  %1221 = vmatmul.mubr.f32.gmra.mrb[116].mxu0 %v709_v60  ;;  %v711_v5 = vmax.f32 %v629_v61, 0.0 }
 0x172   :  { %v712_v3 = vmax.f32 %v631_v2, 0.0  ;;  %v634_v4 = vpop.f32.mrb[56].mxu0 }
 0x173   :  { %v635_v8 = vadd.f32 %v634_v4, %v2565_v49  ;;  %v636_v9 = vpop.f32.mrb[57].mxu0 }
 0x174   :  { %v637_v10 = vadd.f32 %v636_v9, %v2569_v50  ;;  %969 = vmatprep.mubr.f32.mxu1 %v712_v3  ;;  %1226 = vmatprep.mubr.f32.mxu0 %v712_v3 }
 0x175   :  { %970 = vmatmul.mubr.f32.gmra.mrb[54].mxu1 %v711_v5  ;;  %1227 = vmatmul.mubr.f32.gmra.mrb[118].mxu0 %v711_v5  ;;  %v713_v14 = vmax.f32 %v635_v8, 0.0 }
 0x176   :  { %v714_v12 = vmax.f32 %v637_v10, 0.0  ;;  %v640_v13 = vpop.f32.mrb[58].mxu0 }
 0x177   :  { %v641_v17 = vadd.f32 %v640_v13, %v2565_v49  ;;  %v642_v18 = vpop.f32.mrb[59].mxu0 }
 0x178   :  { %v643_v19 = vadd.f32 %v642_v18, %v2569_v50  ;;  %975 = vmatprep.mubr.f32.mxu1 %v714_v12  ;;  %1232 = vmatprep.mubr.f32.mxu0 %v714_v12 }
 0x179   :  { %976 = vmatmul.mubr.f32.gmra.mrb[56].mxu1 %v713_v14  ;;  %1233 = vmatmul.mubr.f32.gmra.mrb[120].mxu0 %v713_v14  ;;  %v715_v24 = vmax.f32 %v641_v17, 0.0 }
 0x17a   :  { %v716_v21 = vmax.f32 %v643_v19, 0.0  ;;  %v646_v22 = vpop.f32.mrb[60].mxu0 }
 0x17b   :  { %v647_v25 = vadd.f32 %v646_v22, %v2565_v49  ;;  %v648_v26 = vpop.f32.mrb[61].mxu0 }
 0x17c   :  { %v649_v27 = vadd.f32 %v648_v26, %v2569_v50  ;;  %981 = vmatprep.mubr.f32.mxu1 %v716_v21  ;;  %1238 = vmatprep.mubr.f32.mxu0 %v716_v21 }
 0x17d   :  { %982 = vmatmul.mubr.f32.gmra.mrb[58].mxu1 %v715_v24  ;;  %1239 = vmatmul.mubr.f32.gmra.mrb[122].mxu0 %v715_v24  ;;  %v717_v32 = vmax.f32 %v647_v25, 0.0 }
 0x17e   :  { %v718_v29 = vmax.f32 %v649_v27, 0.0  ;;  %v652_v31 = vpop.f32.mrb[62].mxu0 }
 0x17f   :  { %v653_v34 = vadd.f32 %v652_v31, %v2565_v49  ;;  %v654_v35 = vpop.f32.mrb[63].mxu0  ;;  %v737_v49 = vsub.s32 3, %v2556_v46 }
 0x180   :  { %v655_v36 = vadd.f32 %v654_v35, %v2569_v50  ;;  %987 = vmatprep.mubr.f32.mxu1 %v718_v29  ;;  %1244 = vmatprep.mubr.f32.mxu0 %v718_v29  ;;  %v2721_v50 = vrot.slane %v721_v41, %v288_v47 }
 0x181   :  { %988 = vmatmul.mubr.f32.gmra.mrb[60].mxu1 %v717_v32  ;;  %1245 = vmatmul.mubr.f32.gmra.mrb[124].mxu0 %v717_v32  ;;  %v719_v38 = vmax.f32 %v653_v34, 0.0  ;;  %v2729_v0 = vrot.slane %v721_v41, %v737_v49 }
 0x182   :  { %v720_v37 = vmax.f32 %v655_v36, 0.0 }
 0x184   :  { %993 = vmatprep.mubr.f32.mxu1 %v720_v37  ;;  %1250 = vmatprep.mubr.f32.mxu0 %v720_v37 }
 0x185   :  { %994 = vmatmul.mubr.f32.gmra.mrb[62].mxu1 %v719_v38  ;;  %1251 = vmatmul.mubr.f32.gmra.mrb[126].mxu0 %v719_v38 }
 0x1dc   :  { %v809_v52 = vpop.f32.mrb[0].mxu1  ;;  %v1066_v53 = vpop.f32.mrb[64].mxu0 }
 0x1dd   :  { %v810_v54 = vadd.f32 %v809_v52, %v2721_v50  ;;  %v1067_v55 = vadd.f32 %v1066_v53, %v2723_v42  ;;  %v811_v56 = vpop.f32.mrb[1].mxu1  ;;  %v1068_v58 = vpop.f32.mrb[65].mxu0 }
 0x1de   :  { %v812_v59 = vadd.f32 %v811_v56, %v2727_v43  ;;  %v1069_v47 = vadd.f32 %v1068_v58, %v2729_v0 }
 0x1df   :  { %v1257_v48 = vmax.f32 %v810_v54, 0.0  ;;  %v1259_v2 = vmax.f32 %v1067_v55, 0.0 }
 0x1e0   :  { %v1258_v60 = vmax.f32 %v812_v59, 0.0  ;;  %v1260_v61 = vmax.f32 %v1069_v47, 0.0  ;;  %v815_v62 = vpop.f32.mrb[2].mxu1  ;;  %v1072_v46 = vpop.f32.mrb[66].mxu0 }
 0x1e1   :  { %v816_v3 = vadd.f32 %v815_v62, %v2721_v50  ;;  %v1073_v4 = vadd.f32 %v1072_v46, %v2723_v42  ;;  %v817_v5 = vpop.f32.mrb[3].mxu1  ;;  %v1074_v8 = vpop.f32.mrb[67].mxu0 }
 0x1e2   :  { %v818_v9 = vadd.f32 %v817_v5, %v2727_v43  ;;  %v1075_v10 = vadd.f32 %v1074_v8, %v2729_v0  ;;  %1456 = vmatprep.mubr.f32.mxu1 %v1258_v60  ;;  %1681 = vmatprep.mubr.f32.mxu0 %v1260_v61 }
 0x1e3   :  { %1457 = vmatmul.mubr.f32.vlgmr.msra.gmra.mrb[64].mxu1 %v1257_v48  ;;  %1682 = vmatmul.mubr.f32.vlgmr.msra.gmra.mrb[128].mxu0 %v1259_v2  ;;  %v1261_v18 = vmax.f32 %v816_v3, 0.0  ;;  %v1263_v19 = vmax.f32 %v1073_v4, 0.0 }
 0x1e4   :  { %v1262_v12 = vmax.f32 %v818_v9, 0.0  ;;  %v1264_v13 = vmax.f32 %v1075_v10, 0.0  ;;  %2159 = vmatpush1.bf16.msra.mxu1 %v2575_v7  ;;  %v821_v14 = vpop.f32.mrb[4].mxu1  ;;  %v1078_v17 = vpop.f32.mrb[68].mxu0 }
 0x1e5   :  { %v822_v21 = vadd.f32 %v821_v14, %v2721_v50  ;;  %v1079_v22 = vadd.f32 %v1078_v17, %v2723_v42  ;;  %v823_v24 = vpop.f32.mrb[5].mxu1  ;;  %v1080_v25 = vpop.f32.mrb[69].mxu0  ;;  %2144 = vmatprep.subr.bf16.mxu1 %v2311_v44 }
 0x1e6   :  { %v824_v26 = vadd.f32 %v823_v24, %v2727_v43  ;;  %v1081_v27 = vadd.f32 %v1080_v25, %v2729_v0  ;;  %1461 = vmatprep.mubr.f32.mxu1 %v1262_v12  ;;  %1686 = vmatprep.mubr.f32.mxu0 %v1264_v13 }
 0x1e7   :  { %1462 = vmatmul.mubr.f32.gmra.mrb[66].mxu1 %v1261_v18  ;;  %1687 = vmatmul.mubr.f32.gmra.mrb[130].mxu0 %v1263_v19  ;;  %v1265_v34 = vmax.f32 %v822_v21, 0.0  ;;  %v1267_v35 = vmax.f32 %v1079_v22, 0.0 }
 0x1e8   :  { %v1266_v7 = vmax.f32 %v824_v26, 0.0  ;;  %v1268_v29 = vmax.f32 %v1081_v27, 0.0  ;;  %v827_v31 = vpop.f32.mrb[6].mxu1  ;;  %v1084_v32 = vpop.f32.mrb[70].mxu0  ;;  %2160 = vmatpush1.bf16.msra.mxu1 %v2580_v16 }
 0x1e9   :  { %v828_v36 = vadd.f32 %v827_v31, %v2721_v50  ;;  %v1085_v37 = vadd.f32 %v1084_v32, %v2723_v42  ;;  %v829_v38 = vpop.f32.mrb[7].mxu1  ;;  %v1086_v39 = vpop.f32.mrb[71].mxu0  ;;  %2145 = vmatprep.subr.bf16.mxu1 %v2311_v44 }
 0x1ea   :  { %v830_v41 = vadd.f32 %v829_v38, %v2727_v43  ;;  %v1087_v49 = vadd.f32 %v1086_v39, %v2729_v0  ;;  %1466 = vmatprep.mubr.f32.mxu1 %v1266_v7  ;;  %1691 = vmatprep.mubr.f32.mxu0 %v1268_v29 }
 0x1eb   :  { %1467 = vmatmul.mubr.f32.gmra.mrb[68].mxu1 %v1265_v34  ;;  %1692 = vmatmul.mubr.f32.gmra.mrb[132].mxu0 %v1267_v35  ;;  %v1269_v55 = vmax.f32 %v828_v36, 0.0  ;;  %v1271_v56 = vmax.f32 %v1085_v37, 0.0 }
 0x1ec   :  { %v1270_v52 = vmax.f32 %v830_v41, 0.0  ;;  %v1272_v16 = vmax.f32 %v1087_v49, 0.0  ;;  %v833_v53 = vpop.f32.mrb[8].mxu1  ;;  %v1090_v54 = vpop.f32.mrb[72].mxu0  ;;  %2161 = vmatpush1.bf16.msra.mxu1 %v2587_v28 }
 0x1ed   :  { %v834_v58 = vadd.f32 %v833_v53, %v2721_v50  ;;  %v1091_v59 = vadd.f32 %v1090_v54, %v2723_v42  ;;  %v835_v47 = vpop.f32.mrb[9].mxu1  ;;  %v1092_v60 = vpop.f32.mrb[73].mxu0  ;;  %2146 = vmatprep.subr.bf16.mxu1 %v2311_v44 }
 0x1ee   :  { %v836_v61 = vadd.f32 %v835_v47, %v2727_v43  ;;  %v1093_v62 = vadd.f32 %v1092_v60, %v2729_v0  ;;  %1471 = vmatprep.mubr.f32.mxu1 %v1270_v52  ;;  %1696 = vmatprep.mubr.f32.mxu0 %v1272_v16 }
 0x1ef   :  { %1472 = vmatmul.mubr.f32.gmra.mrb[70].mxu1 %v1269_v55  ;;  %1697 = vmatmul.mubr.f32.gmra.mrb[134].mxu0 %v1271_v56  ;;  %v1273_v3 = vmax.f32 %v834_v58, 0.0  ;;  %v1275_v4 = vmax.f32 %v1091_v59, 0.0 }
 0x1f0   :  { %v1274_v46 = vmax.f32 %v836_v61, 0.0  ;;  %v1276_v28 = vmax.f32 %v1093_v62, 0.0  ;;  %v839_v48 = vpop.f32.mrb[10].mxu1  ;;  %v1096_v2 = vpop.f32.mrb[74].mxu0  ;;  %2162 = vmatpush1.bf16.msra.mxu1 %v2594_v40 }
 0x1f1   :  { %v840_v5 = vadd.f32 %v839_v48, %v2721_v50  ;;  %v1097_v8 = vadd.f32 %v1096_v2, %v2723_v42  ;;  %v841_v9 = vpop.f32.mrb[11].mxu1  ;;  %v1098_v10 = vpop.f32.mrb[75].mxu0  ;;  %2147 = vmatprep.subr.bf16.mxu1 %v2311_v44 }
 0x1f2   :  { %v842_v12 = vadd.f32 %v841_v9, %v2727_v43  ;;  %v1099_v13 = vadd.f32 %v1098_v10, %v2729_v0  ;;  %1476 = vmatprep.mubr.f32.mxu1 %v1274_v46  ;;  %1701 = vmatprep.mubr.f32.mxu0 %v1276_v28 }
 0x1f3   :  { %1477 = vmatmul.mubr.f32.gmra.mrb[72].mxu1 %v1273_v3  ;;  %1702 = vmatmul.mubr.f32.gmra.mrb[136].mxu0 %v1275_v4  ;;  %v1277_v19 = vmax.f32 %v840_v5, 0.0  ;;  %v1279_v21 = vmax.f32 %v1097_v8, 0.0 }
 0x1f4   :  { %v1278_v14 = vmax.f32 %v842_v12, 0.0  ;;  %v1280_v40 = vmax.f32 %v1099_v13, 0.0  ;;  %v845_v17 = vpop.f32.mrb[12].mxu1  ;;  %v1102_v18 = vpop.f32.mrb[76].mxu0  ;;  %2163 = vmatpush1.bf16.msra.mxu1 %v2601_v57 }
 0x1f5   :  { %v846_v22 = vadd.f32 %v845_v17, %v2721_v50  ;;  %v1103_v24 = vadd.f32 %v1102_v18, %v2723_v42  ;;  %v847_v25 = vpop.f32.mrb[13].mxu1  ;;  %v1104_v26 = vpop.f32.mrb[77].mxu0  ;;  %2148 = vmatprep.subr.bf16.mxu1 %v2311_v44 }
 0x1f6   :  { %v848_v27 = vadd.f32 %v847_v25, %v2727_v43  ;;  %v1105_v7 = vadd.f32 %v1104_v26, %v2729_v0  ;;  %1481 = vmatprep.mubr.f32.mxu1 %v1278_v14  ;;  %1706 = vmatprep.mubr.f32.mxu0 %v1280_v40 }
 0x1f7   :  { %1482 = vmatmul.mubr.f32.gmra.mrb[74].mxu1 %v1277_v19  ;;  %1707 = vmatmul.mubr.f32.gmra.mrb[138].mxu0 %v1279_v21  ;;  %v1281_v34 = vmax.f32 %v846_v22, 0.0  ;;  %v1283_v35 = vmax.f32 %v1103_v24, 0.0 }
 0x1f8   :  { %v1282_v29 = vmax.f32 %v848_v27, 0.0  ;;  %v1284_v57 = vmax.f32 %v1105_v7, 0.0  ;;  %v851_v31 = vpop.f32.mrb[14].mxu1  ;;  %v1108_v32 = vpop.f32.mrb[78].mxu0  ;;  %2164 = vmatpush1.bf16.msra.mxu1 %v2608_v6 }
 0x1f9   :  { %v852_v36 = vadd.f32 %v851_v31, %v2721_v50  ;;  %v1109_v37 = vadd.f32 %v1108_v32, %v2723_v42  ;;  %v853_v38 = vpop.f32.mrb[15].mxu1  ;;  %v1110_v39 = vpop.f32.mrb[79].mxu0  ;;  %2149 = vmatprep.subr.bf16.mxu1 %v2311_v44 }
 0x1fa   :  { %v854_v41 = vadd.f32 %v853_v38, %v2727_v43  ;;  %v1111_v49 = vadd.f32 %v1110_v39, %v2729_v0  ;;  %1486 = vmatprep.mubr.f32.mxu1 %v1282_v29  ;;  %1711 = vmatprep.mubr.f32.mxu0 %v1284_v57 }
 0x1fb   :  { %1487 = vmatmul.mubr.f32.gmra.mrb[76].mxu1 %v1281_v34  ;;  %1712 = vmatmul.mubr.f32.gmra.mrb[140].mxu0 %v1283_v35  ;;  %v1285_v54 = vmax.f32 %v852_v36, 0.0  ;;  %v1287_v55 = vmax.f32 %v1109_v37, 0.0 }
 0x1fc   :  { %v1286_v52 = vmax.f32 %v854_v41, 0.0  ;;  %v1288_v6 = vmax.f32 %v1111_v49, 0.0  ;;  %v857_v16 = vpop.f32.mrb[16].mxu1  ;;  %v1114_v53 = vpop.f32.mrb[80].mxu0  ;;  %2165 = vmatpush1.bf16.msra.mxu1 %v2615_v20 }
 0x1fd   :  { %v858_v56 = vadd.f32 %v857_v16, %v2721_v50  ;;  %v1115_v58 = vadd.f32 %v1114_v53, %v2723_v42  ;;  %v859_v59 = vpop.f32.mrb[17].mxu1  ;;  %v1116_v47 = vpop.f32.mrb[81].mxu0  ;;  %2150 = vmatprep.subr.bf16.mxu1 %v2311_v44 }
 0x1fe   :  { %v860_v60 = vadd.f32 %v859_v59, %v2727_v43  ;;  %v1117_v61 = vadd.f32 %v1116_v47, %v2729_v0  ;;  %1491 = vmatprep.mubr.f32.mxu1 %v1286_v52  ;;  %1716 = vmatprep.mubr.f32.mxu0 %v1288_v6 }
 0x1ff   :  { %1492 = vmatmul.mubr.f32.gmra.mrb[78].mxu1 %v1285_v54  ;;  %1717 = vmatmul.mubr.f32.gmra.mrb[142].mxu0 %v1287_v55  ;;  %v1289_v48 = vmax.f32 %v858_v56, 0.0  ;;  %v1291_v2 = vmax.f32 %v1115_v58, 0.0 }
 0x200   :  { %v1290_v62 = vmax.f32 %v860_v60, 0.0  ;;  %v1292_v20 = vmax.f32 %v1117_v61, 0.0  ;;  %v863_v46 = vpop.f32.mrb[18].mxu1  ;;  %v1120_v28 = vpop.f32.mrb[82].mxu0  ;;  %2166 = vmatpush1.bf16.msra.mxu1 %v2622_v33 }
 0x201   :  { %v864_v3 = vadd.f32 %v863_v46, %v2721_v50  ;;  %v1121_v4 = vadd.f32 %v1120_v28, %v2723_v42  ;;  %v865_v5 = vpop.f32.mrb[19].mxu1  ;;  %v1122_v8 = vpop.f32.mrb[83].mxu0  ;;  %2151 = vmatprep.subr.bf16.mxu1 %v2311_v44 }
 0x202   :  { %v866_v9 = vadd.f32 %v865_v5, %v2727_v43  ;;  %v1123_v10 = vadd.f32 %v1122_v8, %v2729_v0  ;;  %1496 = vmatprep.mubr.f32.mxu1 %v1290_v62  ;;  %1721 = vmatprep.mubr.f32.mxu0 %v1292_v20 }
 0x203   :  { %1497 = vmatmul.mubr.f32.gmra.mrb[80].mxu1 %v1289_v48  ;;  %1722 = vmatmul.mubr.f32.gmra.mrb[144].mxu0 %v1291_v2  ;;  %v1293_v40 = vmax.f32 %v864_v3, 0.0  ;;  %v1295_v17 = vmax.f32 %v1121_v4, 0.0 }
 0x204   :  { %v1294_v12 = vmax.f32 %v866_v9, 0.0  ;;  %v1296_v33 = vmax.f32 %v1123_v10, 0.0  ;;  %v869_v13 = vpop.f32.mrb[20].mxu1  ;;  %v1126_v14 = vpop.f32.mrb[84].mxu0  ;;  %2167 = vmatpush1.bf16.msra.mxu1 %v2629_v51 }
 0x205   :  { %v870_v18 = vadd.f32 %v869_v13, %v2721_v50  ;;  %v1127_v19 = vadd.f32 %v1126_v14, %v2723_v42  ;;  %v871_v21 = vpop.f32.mrb[21].mxu1  ;;  %v1128_v22 = vpop.f32.mrb[85].mxu0  ;;  %2152 = vmatprep.subr.bf16.mxu1 %v2311_v44 }
 0x206   :  { %v872_v24 = vadd.f32 %v871_v21, %v2727_v43  ;;  %v1129_v25 = vadd.f32 %v1128_v22, %v2729_v0  ;;  %1501 = vmatprep.mubr.f32.mxu1 %v1294_v12  ;;  %1726 = vmatprep.mubr.f32.mxu0 %v1296_v33 }
 0x207   :  { %1502 = vmatmul.mubr.f32.gmra.mrb[82].mxu1 %v1293_v40  ;;  %1727 = vmatmul.mubr.f32.gmra.mrb[146].mxu0 %v1295_v17  ;;  %v1297_v29 = vmax.f32 %v870_v18, 0.0  ;;  %v1299_v57 = vmax.f32 %v1127_v19, 0.0 }
 0x208   :  { %v1298_v26 = vmax.f32 %v872_v24, 0.0  ;;  %v1300_v51 = vmax.f32 %v1129_v25, 0.0  ;;  %v875_v27 = vpop.f32.mrb[22].mxu1  ;;  %v1132_v7 = vpop.f32.mrb[86].mxu0  ;;  %2168 = vmatpush1.bf16.msra.mxu1 %v2636_v1 }
 0x209   :  { %v876_v31 = vadd.f32 %v875_v27, %v2721_v50  ;;  %v1133_v32 = vadd.f32 %v1132_v7, %v2723_v42  ;;  %v877_v34 = vpop.f32.mrb[23].mxu1  ;;  %v1134_v35 = vpop.f32.mrb[87].mxu0  ;;  %2153 = vmatprep.subr.bf16.mxu1 %v2311_v44 }
 0x20a   :  { %v878_v36 = vadd.f32 %v877_v34, %v2727_v43  ;;  %v1135_v37 = vadd.f32 %v1134_v35, %v2729_v0  ;;  %1506 = vmatprep.mubr.f32.mxu1 %v1298_v26  ;;  %1731 = vmatprep.mubr.f32.mxu0 %v1300_v51 }
 0x20b   :  { %1507 = vmatmul.mubr.f32.gmra.mrb[84].mxu1 %v1297_v29  ;;  %1732 = vmatmul.mubr.f32.gmra.mrb[148].mxu0 %v1299_v57  ;;  %v1301_v49 = vmax.f32 %v876_v31, 0.0  ;;  %v1303_v52 = vmax.f32 %v1133_v32, 0.0 }
 0x20c   :  { %v1302_v38 = vmax.f32 %v878_v36, 0.0  ;;  %v1304_v1 = vmax.f32 %v1135_v37, 0.0  ;;  %v881_v39 = vpop.f32.mrb[24].mxu1  ;;  %v1138_v41 = vpop.f32.mrb[88].mxu0  ;;  %2169 = vmatpush1.bf16.msra.mxu1 %v2643_v15 }
 0x20d   :  { %v882_v6 = vadd.f32 %v881_v39, %v2721_v50  ;;  %v1139_v16 = vadd.f32 %v1138_v41, %v2723_v42  ;;  %v883_v53 = vpop.f32.mrb[25].mxu1  ;;  %v1140_v54 = vpop.f32.mrb[89].mxu0  ;;  %2154 = vmatprep.subr.bf16.mxu1 %v2311_v44 }
 0x20e   :  { %v884_v55 = vadd.f32 %v883_v53, %v2727_v43  ;;  %v1141_v56 = vadd.f32 %v1140_v54, %v2729_v0  ;;  %1511 = vmatprep.mubr.f32.mxu1 %v1302_v38  ;;  %1736 = vmatprep.mubr.f32.mxu0 %v1304_v1 }
 0x20f   :  { %1512 = vmatmul.mubr.f32.gmra.mrb[86].mxu1 %v1301_v49  ;;  %1737 = vmatmul.mubr.f32.gmra.mrb[150].mxu0 %v1303_v52  ;;  %v1305_v60 = vmax.f32 %v882_v6, 0.0  ;;  %v1307_v61 = vmax.f32 %v1139_v16, 0.0 }
 0x210   :  { %v1306_v58 = vmax.f32 %v884_v55, 0.0  ;;  %v1308_v15 = vmax.f32 %v1141_v56, 0.0  ;;  %v887_v59 = vpop.f32.mrb[26].mxu1  ;;  %v1144_v47 = vpop.f32.mrb[90].mxu0  ;;  %2170 = vmatpush1.bf16.msra.mxu1 %v2650_v30 }
 0x211   :  { %v888_v62 = vadd.f32 %v887_v59, %v2721_v50  ;;  %v1145_v20 = vadd.f32 %v1144_v47, %v2723_v42  ;;  %v889_v46 = vpop.f32.mrb[27].mxu1  ;;  %v1146_v28 = vpop.f32.mrb[91].mxu0  ;;  %2155 = vmatprep.subr.bf16.mxu1 %v2311_v44 }
 0x212   :  { %v890_v48 = vadd.f32 %v889_v46, %v2727_v43  ;;  %v1147_v2 = vadd.f32 %v1146_v28, %v2729_v0  ;;  %1516 = vmatprep.mubr.f32.mxu1 %v1306_v58  ;;  %1741 = vmatprep.mubr.f32.mxu0 %v1308_v15 }
 0x213   :  { %1517 = vmatmul.mubr.f32.gmra.mrb[88].mxu1 %v1305_v60  ;;  %1742 = vmatmul.mubr.f32.gmra.mrb[152].mxu0 %v1307_v61  ;;  %v1309_v8 = vmax.f32 %v888_v62, 0.0  ;;  %v1311_v9 = vmax.f32 %v1145_v20, 0.0 }
 0x214   :  { %v1310_v3 = vmax.f32 %v890_v48, 0.0  ;;  %v1312_v30 = vmax.f32 %v1147_v2, 0.0  ;;  %v893_v4 = vpop.f32.mrb[28].mxu1  ;;  %v1150_v5 = vpop.f32.mrb[92].mxu0  ;;  %2171 = vmatpush1.bf16.msra.mxu1 %v2657_v45 }
 0x215   :  { %v894_v10 = vadd.f32 %v893_v4, %v2721_v50  ;;  %v1151_v12 = vadd.f32 %v1150_v5, %v2723_v42  ;;  %v895_v33 = vpop.f32.mrb[29].mxu1  ;;  %v1152_v13 = vpop.f32.mrb[93].mxu0  ;;  %2156 = vmatprep.subr.bf16.mxu1 %v2311_v44 }
 0x216   :  { %v896_v14 = vadd.f32 %v895_v33, %v2727_v43  ;;  %v1153_v40 = vadd.f32 %v1152_v13, %v2729_v0  ;;  %1521 = vmatprep.mubr.f32.mxu1 %v1310_v3  ;;  %1746 = vmatprep.mubr.f32.mxu0 %v1312_v30 }
 0x217   :  { %1522 = vmatmul.mubr.f32.gmra.mrb[90].mxu1 %v1309_v8  ;;  %1747 = vmatmul.mubr.f32.gmra.mrb[154].mxu0 %v1311_v9  ;;  %v1313_v21 = vmax.f32 %v894_v10, 0.0  ;;  %v1315_v22 = vmax.f32 %v1151_v12, 0.0 }
 0x218   :  { %v1314_v17 = vmax.f32 %v896_v14, 0.0  ;;  %v1316_v45 = vmax.f32 %v1153_v40, 0.0  ;;  %v899_v18 = vpop.f32.mrb[30].mxu1  ;;  %v1156_v19 = vpop.f32.mrb[94].mxu0  ;;  %2172 = vmatpush1.bf16.msra.mxu1 %v2664_v63 }
 0x219   :  { %v900_v24 = vadd.f32 %v899_v18, %v2721_v50  ;;  %v1157_v25 = vadd.f32 %v1156_v19, %v2723_v42  ;;  %v901_v26 = vpop.f32.mrb[31].mxu1  ;;  %v1158_v51 = vpop.f32.mrb[95].mxu0  ;;  %2157 = vmatprep.subr.bf16.mxu1 %v2311_v44 }
 0x21a   :  { %v902_v27 = vadd.f32 %v901_v26, %v2727_v43  ;;  %v1159_v7 = vadd.f32 %v1158_v51, %v2729_v0  ;;  %1526 = vmatprep.mubr.f32.mxu1 %v1314_v17  ;;  %1751 = vmatprep.mubr.f32.mxu0 %v1316_v45 }
 0x21b   :  { %1527 = vmatmul.mubr.f32.gmra.mrb[92].mxu1 %v1313_v21  ;;  %1752 = vmatmul.mubr.f32.gmra.mrb[156].mxu0 %v1315_v22  ;;  %v1317_v32 = vmax.f32 %v900_v24, 0.0  ;;  %v1319_v34 = vmax.f32 %v1157_v25, 0.0 }
 0x21c   :  { %v1318_v29 = vmax.f32 %v902_v27, 0.0  ;;  %v1320_v63 = vmax.f32 %v1159_v7, 0.0  ;;  %v905_v57 = vpop.f32.mrb[32].mxu1  ;;  %v1162_v31 = vpop.f32.mrb[96].mxu0  ;;  %2173 = vmatpush1.bf16.msra.mxu1 %v2687_v11 }
 0x21d   :  { %v906_v35 = vadd.f32 %v905_v57, %v2721_v50  ;;  %v1163_v36 = vadd.f32 %v1162_v31, %v2723_v42  ;;  %v907_v37 = vpop.f32.mrb[33].mxu1  ;;  %v1164_v38 = vpop.f32.mrb[97].mxu0  ;;  %2158 = vmatprep.subr.bf16.mxu1 %v2311_v44 }
 0x21e   :  { %v908_v1 = vadd.f32 %v907_v37, %v2727_v43  ;;  %v1165_v39 = vadd.f32 %v1164_v38, %v2729_v0  ;;  %1531 = vmatprep.mubr.f32.mxu1 %v1318_v29  ;;  %1756 = vmatprep.mubr.f32.mxu0 %v1320_v63 }
 0x21f   :  { %1532 = vmatmul.mubr.f32.gmra.mrb[94].mxu1 %v1317_v32  ;;  %1757 = vmatmul.mubr.f32.gmra.mrb[158].mxu0 %v1319_v34  ;;  %v1321_v6 = vmax.f32 %v906_v35, 0.0  ;;  %v1323_v16 = vmax.f32 %v1163_v36, 0.0 }
 0x220   :  { %v1322_v41 = vmax.f32 %v908_v1, 0.0  ;;  %v1324_v11 = vmax.f32 %v1165_v39, 0.0  ;;  %v911_v49 = vpop.f32.mrb[34].mxu1  ;;  %v1168_v52 = vpop.f32.mrb[98].mxu0  ;;  %2174 = vmatpush1.bf16.msra.mxu1 %v2692_v23 }
 0x221   :  { %v912_v53 = vadd.f32 %v911_v49, %v2721_v50  ;;  %v1169_v44 = vadd.f32 %v1168_v52, %v2723_v42  ;;  %v913_v54 = vpop.f32.mrb[35].mxu1  ;;  %v1170_v55 = vpop.f32.mrb[99].mxu0 }
 0x222   :  { %v914_v56 = vadd.f32 %v913_v54, %v2727_v43  ;;  %v1171_v58 = vadd.f32 %v1170_v55, %v2729_v0  ;;  %1536 = vmatprep.mubr.f32.mxu1 %v1322_v41  ;;  %1761 = vmatprep.mubr.f32.mxu0 %v1324_v11 }
 0x223   :  { %1537 = vmatmul.mubr.f32.gmra.mrb[96].mxu1 %v1321_v6  ;;  %1762 = vmatmul.mubr.f32.gmra.mrb[160].mxu0 %v1323_v16  ;;  %v1325_v60 = vmax.f32 %v912_v53, 0.0  ;;  %v1327_v61 = vmax.f32 %v1169_v44, 0.0 }
 0x224   :  { %v1326_v15 = vmax.f32 %v914_v56, 0.0  ;;  %v1328_v59 = vmax.f32 %v1171_v58, 0.0  ;;  %v917_v47 = vpop.f32.mrb[36].mxu1  ;;  %v1174_v23 = vpop.f32.mrb[100].mxu0 }
 0x225   :  { %v918_v62 = vadd.f32 %v917_v47, %v2721_v50  ;;  %v1175_v20 = vadd.f32 %v1174_v23, %v2723_v42  ;;  %v919_v46 = vpop.f32.mrb[37].mxu1  ;;  %v1176_v28 = vpop.f32.mrb[101].mxu0 }
 0x226   :  { %v920_v48 = vadd.f32 %v919_v46, %v2727_v43  ;;  %v1177_v2 = vadd.f32 %v1176_v28, %v2729_v0  ;;  %1541 = vmatprep.mubr.f32.mxu1 %v1326_v15  ;;  %1766 = vmatprep.mubr.f32.mxu0 %v1328_v59 }
 0x227   :  { %1542 = vmatmul.mubr.f32.gmra.mrb[98].mxu1 %v1325_v60  ;;  %1767 = vmatmul.mubr.f32.gmra.mrb[162].mxu0 %v1327_v61  ;;  %v1329_v8 = vmax.f32 %v918_v62, 0.0  ;;  %v1331_v9 = vmax.f32 %v1175_v20, 0.0 }
 0x228   :  { %v1330_v3 = vmax.f32 %v920_v48, 0.0  ;;  %v1332_v30 = vmax.f32 %v1177_v2, 0.0  ;;  %v923_v4 = vpop.f32.mrb[38].mxu1  ;;  %v1180_v5 = vpop.f32.mrb[102].mxu0 }
 0x229   :  { %v924_v10 = vadd.f32 %v923_v4, %v2721_v50  ;;  %v1181_v12 = vadd.f32 %v1180_v5, %v2723_v42  ;;  %v925_v33 = vpop.f32.mrb[39].mxu1  ;;  %v1182_v13 = vpop.f32.mrb[103].mxu0 }
 0x22a   :  { %v926_v14 = vadd.f32 %v925_v33, %v2727_v43  ;;  %v1183_v40 = vadd.f32 %v1182_v13, %v2729_v0  ;;  %1546 = vmatprep.mubr.f32.mxu1 %v1330_v3  ;;  %1771 = vmatprep.mubr.f32.mxu0 %v1332_v30 }
 0x22b   :  { %1547 = vmatmul.mubr.f32.gmra.mrb[100].mxu1 %v1329_v8  ;;  %1772 = vmatmul.mubr.f32.gmra.mrb[164].mxu0 %v1331_v9  ;;  %v1333_v21 = vmax.f32 %v924_v10, 0.0  ;;  %v1335_v22 = vmax.f32 %v1181_v12, 0.0 }
 0x22c   :  { %v1334_v17 = vmax.f32 %v926_v14, 0.0  ;;  %v1336_v45 = vmax.f32 %v1183_v40, 0.0  ;;  %v929_v18 = vpop.f32.mrb[40].mxu1  ;;  %v1186_v19 = vpop.f32.mrb[104].mxu0 }
 0x22d   :  { %v930_v24 = vadd.f32 %v929_v18, %v2721_v50  ;;  %v1187_v25 = vadd.f32 %v1186_v19, %v2723_v42  ;;  %v931_v26 = vpop.f32.mrb[41].mxu1  ;;  %v1188_v51 = vpop.f32.mrb[105].mxu0 }
 0x22e   :  { %v932_v27 = vadd.f32 %v931_v26, %v2727_v43  ;;  %v1189_v7 = vadd.f32 %v1188_v51, %v2729_v0  ;;  %1551 = vmatprep.mubr.f32.mxu1 %v1334_v17  ;;  %1776 = vmatprep.mubr.f32.mxu0 %v1336_v45 }
 0x22f   :  { %1552 = vmatmul.mubr.f32.gmra.mrb[102].mxu1 %v1333_v21  ;;  %1777 = vmatmul.mubr.f32.gmra.mrb[166].mxu0 %v1335_v22  ;;  %v1337_v32 = vmax.f32 %v930_v24, 0.0  ;;  %v1339_v34 = vmax.f32 %v1187_v25, 0.0 }
 0x230   :  { %v1338_v29 = vmax.f32 %v932_v27, 0.0  ;;  %v1340_v63 = vmax.f32 %v1189_v7, 0.0  ;;  %v935_v57 = vpop.f32.mrb[42].mxu1  ;;  %v1192_v31 = vpop.f32.mrb[106].mxu0 }
 0x231   :  { %v936_v35 = vadd.f32 %v935_v57, %v2721_v50  ;;  %v1193_v36 = vadd.f32 %v1192_v31, %v2723_v42  ;;  %v937_v37 = vpop.f32.mrb[43].mxu1  ;;  %v1194_v38 = vpop.f32.mrb[107].mxu0 }
 0x232   :  { %v938_v1 = vadd.f32 %v937_v37, %v2727_v43  ;;  %v1195_v39 = vadd.f32 %v1194_v38, %v2729_v0  ;;  %1556 = vmatprep.mubr.f32.mxu1 %v1338_v29  ;;  %1781 = vmatprep.mubr.f32.mxu0 %v1340_v63 }
 0x233   :  { %1557 = vmatmul.mubr.f32.gmra.mrb[104].mxu1 %v1337_v32  ;;  %1782 = vmatmul.mubr.f32.gmra.mrb[168].mxu0 %v1339_v34  ;;  %v1341_v6 = vmax.f32 %v936_v35, 0.0  ;;  %v1343_v16 = vmax.f32 %v1193_v36, 0.0 }
 0x234   :  { %v1342_v41 = vmax.f32 %v938_v1, 0.0  ;;  %v1344_v11 = vmax.f32 %v1195_v39, 0.0  ;;  %v941_v49 = vpop.f32.mrb[44].mxu1  ;;  %v1198_v52 = vpop.f32.mrb[108].mxu0 }
 0x235   :  { %v942_v53 = vadd.f32 %v941_v49, %v2721_v50  ;;  %v1199_v44 = vadd.f32 %v1198_v52, %v2723_v42  ;;  %v943_v54 = vpop.f32.mrb[45].mxu1  ;;  %v1200_v55 = vpop.f32.mrb[109].mxu0 }
 0x236   :  { %v944_v56 = vadd.f32 %v943_v54, %v2727_v43  ;;  %v1201_v58 = vadd.f32 %v1200_v55, %v2729_v0  ;;  %1561 = vmatprep.mubr.f32.mxu1 %v1342_v41  ;;  %1786 = vmatprep.mubr.f32.mxu0 %v1344_v11 }
 0x237   :  { %1562 = vmatmul.mubr.f32.gmra.mrb[106].mxu1 %v1341_v6  ;;  %1787 = vmatmul.mubr.f32.gmra.mrb[170].mxu0 %v1343_v16  ;;  %v1345_v60 = vmax.f32 %v942_v53, 0.0  ;;  %v1347_v61 = vmax.f32 %v1199_v44, 0.0 }
 0x238   :  { %v1346_v15 = vmax.f32 %v944_v56, 0.0  ;;  %v1348_v59 = vmax.f32 %v1201_v58, 0.0  ;;  %v947_v47 = vpop.f32.mrb[46].mxu1  ;;  %v2854_v23 = vpop.f32.mrb[110].mxu0 }
 0x239   :  { %v948_v62 = vadd.f32 %v947_v47, %v2721_v50  ;;  %v949_v20 = vpop.f32.mrb[47].mxu1  ;;  %v2857_v46 = vpop.f32.mrb[111].mxu0 }
 0x23a   :  { %v950_v28 = vadd.f32 %v949_v20, %v2727_v43  ;;  %1566 = vmatprep.mubr.f32.mxu1 %v1346_v15  ;;  %1791 = vmatprep.mubr.f32.mxu0 %v1348_v59 }
 0x23b   :  { %1567 = vmatmul.mubr.f32.gmra.mrb[108].mxu1 %v1345_v60  ;;  %1792 = vmatmul.mubr.f32.gmra.mrb[172].mxu0 %v1347_v61  ;;  %v1349_v30 = vmax.f32 %v948_v62, 0.0 }
 0x23c   :  { %v1350_v48 = vmax.f32 %v950_v28, 0.0  ;;  %v953_v2 = vpop.f32.mrb[48].mxu1  ;;  %v2860_v3 = vpop.f32.mrb[112].mxu0 }
 0x23d   :  { %v954_v4 = vadd.f32 %v953_v2, %v2721_v50  ;;  %v955_v5 = vpop.f32.mrb[49].mxu1  ;;  %v2863_v8 = vpop.f32.mrb[113].mxu0 }
 0x23e   :  { %v956_v9 = vadd.f32 %v955_v5, %v2727_v43  ;;  %1571 = vmatprep.mubr.f32.mxu1 %v1350_v48 }
 0x23f   :  { %1572 = vmatmul.mubr.f32.gmra.mrb[110].mxu1 %v1349_v30  ;;  %v1353_v13 = vmax.f32 %v954_v4, 0.0 }
 0x240   :  { %v1354_v10 = vmax.f32 %v956_v9, 0.0  ;;  %v959_v12 = vpop.f32.mrb[50].mxu1  ;;  %v2866_v33 = vpop.f32.mrb[114].mxu0  ;;  %v1207_v9 = vadd.f32 %v2857_v46, %v2729_v0  ;;  %v1211_v46 = vadd.f32 %v2860_v3, %v2723_v42 }
 0x241   :  { %v960_v14 = vadd.f32 %v959_v12, %v2721_v50  ;;  %v961_v40 = vpop.f32.mrb[51].mxu1  ;;  %v2869_v17 = vpop.f32.mrb[115].mxu0 }
 0x242   :  { %v962_v45 = vadd.f32 %v961_v40, %v2727_v43  ;;  %1576 = vmatprep.mubr.f32.mxu1 %v1354_v10  ;;  %v1352_v40 = vmax.f32 %v1207_v9, 0.0 }
 0x243   :  { %1577 = vmatmul.mubr.f32.gmra.mrb[112].mxu1 %v1353_v13  ;;  %v1357_v22 = vmax.f32 %v960_v14, 0.0  ;;  %v1205_v13 = vadd.f32 %v2854_v23, %v2723_v42  ;;  %v1217_v23 = vadd.f32 %v2866_v33, %v2723_v42 }
 0x244   :  { %v1358_v18 = vmax.f32 %v962_v45, 0.0  ;;  %v965_v19 = vpop.f32.mrb[52].mxu1  ;;  %v2872_v21 = vpop.f32.mrb[116].mxu0  ;;  %v1213_v45 = vadd.f32 %v2863_v8, %v2729_v0 }
 0x245   :  { %v966_v24 = vadd.f32 %v965_v19, %v2721_v50  ;;  %v967_v25 = vpop.f32.mrb[53].mxu1  ;;  %v2875_v26 = vpop.f32.mrb[117].mxu0  ;;  %v1355_v19 = vmax.f32 %v1211_v46, 0.0  ;;  %v1223_v3 = vadd.f32 %v2872_v21, %v2723_v42 }
 0x246   :  { %v968_v51 = vadd.f32 %v967_v25, %v2727_v43  ;;  %1581 = vmatprep.mubr.f32.mxu1 %v1358_v18  ;;  %v1356_v18 = vmax.f32 %v1213_v45, 0.0  ;;  %v1225_v8 = vadd.f32 %v2875_v26, %v2729_v0 }
 0x247   :  { %1582 = vmatmul.mubr.f32.gmra.mrb[114].mxu1 %v1357_v22  ;;  %v1361_v63 = vmax.f32 %v966_v24, 0.0  ;;  %v1359_v24 = vmax.f32 %v1217_v23, 0.0 }
 0x248   :  { %v1362_v27 = vmax.f32 %v968_v51, 0.0  ;;  %v971_v7 = vpop.f32.mrb[54].mxu1  ;;  %v2878_v29 = vpop.f32.mrb[118].mxu0  ;;  %v1364_v25 = vmax.f32 %v1225_v8, 0.0  ;;  %v1363_v51 = vmax.f32 %v1223_v3, 0.0 }
 0x249   :  { %v972_v57 = vadd.f32 %v971_v7, %v2721_v50  ;;  %v973_v31 = vpop.f32.mrb[55].mxu1  ;;  %v2881_v32 = vpop.f32.mrb[119].mxu0  ;;  %v1229_v33 = vadd.f32 %v2878_v29, %v2723_v42 }
 0x24a   :  { %v974_v34 = vadd.f32 %v973_v31, %v2727_v43  ;;  %1586 = vmatprep.mubr.f32.mxu1 %v1362_v27 }
 0x24b   :  { %1587 = vmatmul.mubr.f32.gmra.mrb[116].mxu1 %v1361_v63  ;;  %v1365_v38 = vmax.f32 %v972_v57, 0.0  ;;  %v1367_v7 = vmax.f32 %v1229_v33, 0.0 }
 0x24c   :  { %v1366_v35 = vmax.f32 %v974_v34, 0.0  ;;  %v977_v36 = vpop.f32.mrb[56].mxu1  ;;  %v2884_v37 = vpop.f32.mrb[120].mxu0 }
 0x24d   :  { %v978_v1 = vadd.f32 %v977_v36, %v2721_v50  ;;  %v979_v39 = vpop.f32.mrb[57].mxu1  ;;  %v2887_v41 = vpop.f32.mrb[121].mxu0  ;;  %v1235_v21 = vadd.f32 %v2884_v37, %v2723_v42 }
 0x24e   :  { %v980_v11 = vadd.f32 %v979_v39, %v2727_v43  ;;  %1591 = vmatprep.mubr.f32.mxu1 %v1366_v35  ;;  %v1237_v26 = vadd.f32 %v2887_v41, %v2729_v0 }
 0x24f   :  { %1592 = vmatmul.mubr.f32.gmra.mrb[118].mxu1 %v1365_v38  ;;  %v1369_v16 = vmax.f32 %v978_v1, 0.0  ;;  %v1371_v31 = vmax.f32 %v1235_v21, 0.0 }
 0x250   :  { %v1370_v49 = vmax.f32 %v980_v11, 0.0  ;;  %v983_v52 = vpop.f32.mrb[58].mxu1  ;;  %v2890_v6 = vpop.f32.mrb[122].mxu0  ;;  %v1372_v63 = vmax.f32 %v1237_v26, 0.0 }
 0x251   :  { %v984_v53 = vadd.f32 %v983_v52, %v2721_v50  ;;  %v985_v44 = vpop.f32.mrb[59].mxu1  ;;  %v1242_v54 = vpop.f32.mrb[123].mxu0 }
 0x252   :  { %v986_v55 = vadd.f32 %v985_v44, %v2727_v43  ;;  %1596 = vmatprep.mubr.f32.mxu1 %v1370_v49  ;;  %v1243_v57 = vadd.f32 %v1242_v54, %v2729_v0  ;;  %v2935_v49 = vld [vmem:[%s3071_s6] ss:$0 sm:$0xff] }
 0x253   :  { %1597 = vmatmul.mubr.f32.gmra.mrb[120].mxu1 %v1369_v16  ;;  %v1373_v59 = vmax.f32 %v984_v53, 0.0 }
 0x254   :  { %v1374_v56 = vmax.f32 %v986_v55, 0.0  ;;  %v989_v58 = vpop.f32.mrb[60].mxu1  ;;  %v2894_v15 = vpop.f32.mrb[124].mxu0  ;;  %v1376_v29 = vmax.f32 %v1243_v57, 0.0 }
 0x255   :  { %v990_v47 = vadd.f32 %v989_v58, %v2721_v50  ;;  %v991_v60 = vpop.f32.mrb[61].mxu1  ;;  %v1248_v61 = vpop.f32.mrb[125].mxu0  ;;  %v1247_v36 = vadd.f32 %v2894_v15, %v2723_v42 }
 0x256   :  { %v992_v62 = vadd.f32 %v991_v60, %v2727_v43  ;;  %1601 = vmatprep.mubr.f32.mxu1 %v1374_v56  ;;  %v1249_v34 = vadd.f32 %v1248_v61, %v2729_v0 }
 0x257   :  { %1602 = vmatmul.mubr.f32.gmra.mrb[122].mxu1 %v1373_v59  ;;  %v1377_v2 = vmax.f32 %v990_v47, 0.0  ;;  %v1379_v1 = vmax.f32 %v1247_v36, 0.0 }
 0x258   :  { %v1378_v20 = vmax.f32 %v992_v62, 0.0  ;;  %v995_v28 = vpop.f32.mrb[62].mxu1  ;;  %v1252_v48 = vpop.f32.mrb[126].mxu0  ;;  %v1380_v38 = vmax.f32 %v1249_v34, 0.0 }
 0x259   :  { %v996_v30 = vadd.f32 %v995_v28, %v2721_v50  ;;  %v997_v4 = vpop.f32.mrb[63].mxu1  ;;  %v1254_v5 = vpop.f32.mrb[127].mxu0  ;;  %v1351_v50 = vmax.f32 %v1205_v13, 0.0  ;;  %v1253_v39 = vadd.f32 %v1252_v48, %v2723_v42 }
 0x25a   :  { %v998_v10 = vadd.f32 %v997_v4, %v2727_v43  ;;  %1606 = vmatprep.mubr.f32.mxu1 %v1378_v20  ;;  %v1219_v43 = vadd.f32 %v2869_v17, %v2729_v0  ;;  %v1231_v17 = vadd.f32 %v2881_v32, %v2729_v0  ;;  %v1241_v32 = vadd.f32 %v2890_v6, %v2723_v42 }
 0x25b   :  { %1607 = vmatmul.mubr.f32.gmra.mrb[124].mxu1 %v1377_v2  ;;  %v1381_v14 = vmax.f32 %v996_v30, 0.0  ;;  %v1255_v37 = vadd.f32 %v1254_v5, %v2729_v0  ;;  %v1383_v11 = vmax.f32 %v1253_v39, 0.0 }
 0x25c   :  { %v1382_v12 = vmax.f32 %v998_v10, 0.0  ;;  %v1360_v22 = vmax.f32 %v1219_v43, 0.0  ;;  %v1368_v27 = vmax.f32 %v1231_v17, 0.0  ;;  %v1375_v35 = vmax.f32 %v1241_v32, 0.0 }
 0x25d   :  { %v1384_v41 = vmax.f32 %v1255_v37, 0.0 }
 0x25e   :  { %1611 = vmatprep.mubr.f32.mxu1 %v1382_v12 }
 0x25f   :  { %1612 = vmatmul.mubr.f32.gmra.mrb[126].mxu1 %v1381_v14 }
 0x260   :  { %1796 = vmatprep.mubr.f32.mxu1 %v1352_v40 }
 0x263   :  { %1797 = vmatmul.mubr.f32.vlgmr.msra.gmra.mrb[110].mxu1 %v1351_v50 }
 0x264   :  { %1801 = vmatprep.mubr.f32.mxu1 %v1356_v18 }
 0x267   :  { %1802 = vmatmul.mubr.f32.gmra.mrb[112].mxu1 %v1355_v19 }
 0x268   :  { %1806 = vmatprep.mubr.f32.mxu1 %v1360_v22 }
 0x26b   :  { %1807 = vmatmul.mubr.f32.gmra.mrb[114].mxu1 %v1359_v24 }
 0x26c   :  { %1811 = vmatprep.mubr.f32.mxu1 %v1364_v25 }
 0x26f   :  { %1812 = vmatmul.mubr.f32.gmra.mrb[116].mxu1 %v1363_v51 }
 0x270   :  { %1816 = vmatprep.mubr.f32.mxu1 %v1368_v27 }
 0x273   :  { %1817 = vmatmul.mubr.f32.gmra.mrb[118].mxu1 %v1367_v7 }
 0x274   :  { %1821 = vmatprep.mubr.f32.mxu1 %v1372_v63 }
 0x277   :  { %1822 = vmatmul.mubr.f32.gmra.mrb[120].mxu1 %v1371_v31 }
 0x278   :  { %1826 = vmatprep.mubr.f32.mxu1 %v1376_v29 }
 0x27b   :  { %1827 = vmatmul.mubr.f32.gmra.mrb[122].mxu1 %v1375_v35 }
 0x27c   :  { %1831 = vmatprep.mubr.f32.mxu1 %v1380_v38 }
 0x27f   :  { %1832 = vmatmul.mubr.f32.gmra.mrb[124].mxu1 %v1379_v1 }
 0x280   :  { %1836 = vmatprep.mubr.f32.mxu1 %v1384_v41 }
 0x283   :  { %1837 = vmatmul.mubr.f32.gmra.mrb[126].mxu1 %v1383_v11 }
 0x2b6   :  { %v1458_v52 = vpop.f32.mrb[64].mxu1  ;;  %v1683_v6 = vpop.f32.mrb[128].mxu0 }
 0x2b7   :  { %v1459_v16 = vadd.f32 %v2935_v49, %v1458_v52  ;;  %v1460_v0 = vpop.f32.mrb[65].mxu1  ;;  %v1685_v53 = vpop.f32.mrb[129].mxu0 }
 0x2b9   :  { %v1684_v44 = vadd.f32 %v1683_v6, %v1459_v16 }
 0x2ba   :  { %v1463_v54 = vpop.f32.mrb[66].mxu1  ;;  %v1688_v55 = vpop.f32.mrb[130].mxu0 }
 0x2bb   :  { %1842 = vst [vmem:[%s3072_s7] sm:$0xff] %v1684_v44  ;;  %v1464_v42 = vadd.f32 %v2935_v49, %v1463_v54  ;;  %v1465_v56 = vpop.f32.mrb[67].mxu1  ;;  %v1690_v58 = vpop.f32.mrb[131].mxu0 }
 0x2bd   :  { %v1689_v15 = vadd.f32 %v1688_v55, %v1464_v42 }
 0x2be   :  { %v1468_v59 = vpop.f32.mrb[68].mxu1  ;;  %v1693_v47 = vpop.f32.mrb[132].mxu0 }
 0x2bf   :  { %1843 = vst [vmem:[%s3072_s7 + $0x8] sm:$0xff] %v1689_v15  ;;  %v1469_v60 = vadd.f32 %v2935_v49, %v1468_v59  ;;  %v1470_v61 = vpop.f32.mrb[69].mxu1  ;;  %v1695_v62 = vpop.f32.mrb[133].mxu0 }
 0x2c1   :  { %v1694_v20 = vadd.f32 %v1693_v47, %v1469_v60 }
 0x2c2   :  { %v1473_v28 = vpop.f32.mrb[70].mxu1  ;;  %v1698_v48 = vpop.f32.mrb[134].mxu0 }
 0x2c3   :  { %1844 = vst [vmem:[%s3072_s7 + $0x10] sm:$0xff] %v1694_v20  ;;  %v1474_v2 = vadd.f32 %v2935_v49, %v1473_v28  ;;  %v1475_v30 = vpop.f32.mrb[71].mxu1  ;;  %v1700_v4 = vpop.f32.mrb[135].mxu0 }
 0x2c5   :  { %v1699_v5 = vadd.f32 %v1698_v48, %v1474_v2 }
 0x2c6   :  { %v1478_v9 = vpop.f32.mrb[72].mxu1  ;;  %v1703_v10 = vpop.f32.mrb[136].mxu0 }
 0x2c7   :  { %1845 = vst [vmem:[%s3072_s7 + $0x18] sm:$0xff] %v1699_v5  ;;  %v1479_v12 = vadd.f32 %v2935_v49, %v1478_v9  ;;  %v1480_v13 = vpop.f32.mrb[73].mxu1  ;;  %v1705_v14 = vpop.f32.mrb[137].mxu0 }
 0x2c9   :  { %v1704_v40 = vadd.f32 %v1703_v10, %v1479_v12 }
 0x2ca   :  { %v1483_v45 = vpop.f32.mrb[74].mxu1  ;;  %v1708_v50 = vpop.f32.mrb[138].mxu0 }
 0x2cb   :  { %1846 = vst [vmem:[%s3072_s7 + $0x20] sm:$0xff] %v1704_v40  ;;  %v1484_v46 = vadd.f32 %v2935_v49, %v1483_v45  ;;  %v1485_v18 = vpop.f32.mrb[75].mxu1  ;;  %v1710_v43 = vpop.f32.mrb[139].mxu0 }
 0x2cd   :  { %v1709_v19 = vadd.f32 %v1708_v50, %v1484_v46 }
 0x2ce   :  { %v1488_v23 = vpop.f32.mrb[76].mxu1  ;;  %v1713_v22 = vpop.f32.mrb[140].mxu0 }
 0x2cf   :  { %1847 = vst [vmem:[%s3072_s7 + $0x28] sm:$0xff] %v1709_v19  ;;  %v1489_v8 = vadd.f32 %v2935_v49, %v1488_v23  ;;  %v1490_v24 = vpop.f32.mrb[77].mxu1  ;;  %v1715_v3 = vpop.f32.mrb[141].mxu0 }
 0x2d1   :  { %v1714_v25 = vadd.f32 %v1713_v22, %v1489_v8 }
 0x2d2   :  { %v1493_v17 = vpop.f32.mrb[78].mxu1  ;;  %v1718_v51 = vpop.f32.mrb[142].mxu0 }
 0x2d3   :  { %1848 = vst [vmem:[%s3072_s7 + $0x30] sm:$0xff] %v1714_v25  ;;  %v1494_v33 = vadd.f32 %v2935_v49, %v1493_v17  ;;  %v1495_v27 = vpop.f32.mrb[79].mxu1  ;;  %v1720_v26 = vpop.f32.mrb[143].mxu0 }
 0x2d5   :  { %v1719_v7 = vadd.f32 %v1718_v51, %v1494_v33 }
 0x2d6   :  { %v1498_v21 = vpop.f32.mrb[80].mxu1  ;;  %v1723_v63 = vpop.f32.mrb[144].mxu0 }
 0x2d7   :  { %1849 = vst [vmem:[%s3072_s7 + $0x38] sm:$0xff] %v1719_v7  ;;  %v1499_v57 = vadd.f32 %v2935_v49, %v1498_v21  ;;  %v1500_v31 = vpop.f32.mrb[81].mxu1  ;;  %v1725_v32 = vpop.f32.mrb[145].mxu0 }
 0x2d9   :  { %v1724_v29 = vadd.f32 %v1723_v63, %v1499_v57 }
 0x2da   :  { %v1503_v34 = vpop.f32.mrb[82].mxu1  ;;  %v1728_v35 = vpop.f32.mrb[146].mxu0 }
 0x2db   :  { %1850 = vst [vmem:[%s3072_s7 + $0x40] sm:$0xff] %v1724_v29  ;;  %v1504_v36 = vadd.f32 %v2935_v49, %v1503_v34  ;;  %v1505_v38 = vpop.f32.mrb[83].mxu1  ;;  %v1730_v37 = vpop.f32.mrb[147].mxu0 }
 0x2dd   :  { %v1729_v1 = vadd.f32 %v1728_v35, %v1504_v36 }
 0x2de   :  { %v1508_v39 = vpop.f32.mrb[84].mxu1  ;;  %v1733_v41 = vpop.f32.mrb[148].mxu0 }
 0x2df   :  { %1851 = vst [vmem:[%s3072_s7 + $0x48] sm:$0xff] %v1729_v1  ;;  %v1509_v11 = vadd.f32 %v2935_v49, %v1508_v39  ;;  %v1510_v52 = vpop.f32.mrb[85].mxu1  ;;  %v1735_v6 = vpop.f32.mrb[149].mxu0 }
 0x2e1   :  { %v1734_v16 = vadd.f32 %v1733_v41, %v1509_v11 }
 0x2e2   :  { %v1513_v0 = vpop.f32.mrb[86].mxu1  ;;  %v1738_v53 = vpop.f32.mrb[150].mxu0 }
 0x2e3   :  { %1852 = vst [vmem:[%s3072_s7 + $0x50] sm:$0xff] %v1734_v16  ;;  %v1514_v44 = vadd.f32 %v2935_v49, %v1513_v0  ;;  %v1515_v54 = vpop.f32.mrb[87].mxu1  ;;  %v1740_v55 = vpop.f32.mrb[151].mxu0 }
 0x2e5   :  { %v1739_v42 = vadd.f32 %v1738_v53, %v1514_v44 }
 0x2e6   :  { %v1518_v56 = vpop.f32.mrb[88].mxu1  ;;  %v1743_v58 = vpop.f32.mrb[152].mxu0 }
 0x2e7   :  { %1853 = vst [vmem:[%s3072_s7 + $0x58] sm:$0xff] %v1739_v42  ;;  %v1519_v15 = vadd.f32 %v2935_v49, %v1518_v56  ;;  %v1520_v59 = vpop.f32.mrb[89].mxu1  ;;  %v1745_v47 = vpop.f32.mrb[153].mxu0 }
 0x2e9   :  { %v1744_v60 = vadd.f32 %v1743_v58, %v1519_v15 }
 0x2ea   :  { %v1523_v61 = vpop.f32.mrb[90].mxu1  ;;  %v1748_v62 = vpop.f32.mrb[154].mxu0 }
 0x2eb   :  { %1854 = vst [vmem:[%s3072_s7 + $0x60] sm:$0xff] %v1744_v60  ;;  %v1524_v20 = vadd.f32 %v2935_v49, %v1523_v61  ;;  %v1525_v28 = vpop.f32.mrb[91].mxu1  ;;  %v1750_v48 = vpop.f32.mrb[155].mxu0 }
 0x2ed   :  { %v1749_v2 = vadd.f32 %v1748_v62, %v1524_v20 }
 0x2ee   :  { %v1528_v30 = vpop.f32.mrb[92].mxu1  ;;  %v1753_v4 = vpop.f32.mrb[156].mxu0 }
 0x2ef   :  { %1855 = vst [vmem:[%s3072_s7 + $0x68] sm:$0xff] %v1749_v2  ;;  %v1529_v5 = vadd.f32 %v2935_v49, %v1528_v30  ;;  %v1530_v9 = vpop.f32.mrb[93].mxu1  ;;  %v1755_v10 = vpop.f32.mrb[157].mxu0 }
 0x2f1   :  { %v1754_v12 = vadd.f32 %v1753_v4, %v1529_v5 }
 0x2f2   :  { %v1533_v13 = vpop.f32.mrb[94].mxu1  ;;  %v1758_v14 = vpop.f32.mrb[158].mxu0 }
 0x2f3   :  { %1856 = vst [vmem:[%s3072_s7 + $0x70] sm:$0xff] %v1754_v12  ;;  %v1534_v40 = vadd.f32 %v2935_v49, %v1533_v13  ;;  %v1535_v45 = vpop.f32.mrb[95].mxu1  ;;  %v1760_v50 = vpop.f32.mrb[159].mxu0 }
 0x2f5   :  { %v1759_v46 = vadd.f32 %v1758_v14, %v1534_v40 }
 0x2f6   :  { %v1538_v18 = vpop.f32.mrb[96].mxu1  ;;  %v1763_v43 = vpop.f32.mrb[160].mxu0 }
 0x2f7   :  { %1857 = vst [vmem:[%s3072_s7 + $0x78] sm:$0xff] %v1759_v46  ;;  %v1539_v19 = vadd.f32 %v2935_v49, %v1538_v18  ;;  %v1540_v23 = vpop.f32.mrb[97].mxu1  ;;  %v1765_v22 = vpop.f32.mrb[161].mxu0 }
 0x2f9   :  { %v1764_v8 = vadd.f32 %v1763_v43, %v1539_v19 }
 0x2fa   :  { %v1543_v24 = vpop.f32.mrb[98].mxu1  ;;  %v1768_v3 = vpop.f32.mrb[162].mxu0 }
 0x2fb   :  { %1858 = vst [vmem:[%s3072_s7 + $0x80] sm:$0xff] %v1764_v8  ;;  %v1544_v25 = vadd.f32 %v2935_v49, %v1543_v24  ;;  %v1545_v17 = vpop.f32.mrb[99].mxu1  ;;  %v1770_v51 = vpop.f32.mrb[163].mxu0 }
 0x2fd   :  { %v1769_v33 = vadd.f32 %v1768_v3, %v1544_v25 }
 0x2fe   :  { %v1548_v27 = vpop.f32.mrb[100].mxu1  ;;  %v1773_v26 = vpop.f32.mrb[164].mxu0 }
 0x2ff   :  { %1859 = vst [vmem:[%s3072_s7 + $0x88] sm:$0xff] %v1769_v33  ;;  %v1549_v7 = vadd.f32 %v2935_v49, %v1548_v27  ;;  %v1550_v21 = vpop.f32.mrb[101].mxu1  ;;  %v1775_v63 = vpop.f32.mrb[165].mxu0 }
 0x301   :  { %v1774_v57 = vadd.f32 %v1773_v26, %v1549_v7 }
 0x302   :  { %v1553_v31 = vpop.f32.mrb[102].mxu1  ;;  %v1778_v32 = vpop.f32.mrb[166].mxu0 }
 0x303   :  { %1860 = vst [vmem:[%s3072_s7 + $0x90] sm:$0xff] %v1774_v57  ;;  %v1554_v29 = vadd.f32 %v2935_v49, %v1553_v31  ;;  %v1555_v34 = vpop.f32.mrb[103].mxu1  ;;  %v1780_v35 = vpop.f32.mrb[167].mxu0 }
 0x305   :  { %v1779_v36 = vadd.f32 %v1778_v32, %v1554_v29 }
 0x306   :  { %v1558_v38 = vpop.f32.mrb[104].mxu1  ;;  %v1783_v37 = vpop.f32.mrb[168].mxu0 }
 0x307   :  { %1861 = vst [vmem:[%s3072_s7 + $0x98] sm:$0xff] %v1779_v36  ;;  %v1559_v1 = vadd.f32 %v2935_v49, %v1558_v38  ;;  %v1560_v39 = vpop.f32.mrb[105].mxu1  ;;  %v1785_v41 = vpop.f32.mrb[169].mxu0 }
 0x309   :  { %v1784_v11 = vadd.f32 %v1783_v37, %v1559_v1 }
 0x30a   :  { %v1563_v52 = vpop.f32.mrb[106].mxu1  ;;  %v1788_v6 = vpop.f32.mrb[170].mxu0 }
 0x30b   :  { %1862 = vst [vmem:[%s3072_s7 + $0xa0] sm:$0xff] %v1784_v11  ;;  %v1564_v16 = vadd.f32 %v2935_v49, %v1563_v52  ;;  %v1565_v0 = vpop.f32.mrb[107].mxu1  ;;  %v1790_v53 = vpop.f32.mrb[171].mxu0 }
 0x30d   :  { %v1789_v44 = vadd.f32 %v1788_v6, %v1564_v16 }
 0x30e   :  { %v1568_v54 = vpop.f32.mrb[108].mxu1  ;;  %v1793_v55 = vpop.f32.mrb[172].mxu0 }
 0x30f   :  { %1863 = vst [vmem:[%s3072_s7 + $0xa8] sm:$0xff] %v1789_v44  ;;  %v1569_v42 = vadd.f32 %v2935_v49, %v1568_v54  ;;  %v1570_v56 = vpop.f32.mrb[109].mxu1  ;;  %v1795_v58 = vpop.f32.mrb[173].mxu0 }
 0x311   :  { %v1794_v15 = vadd.f32 %v1793_v55, %v1569_v42 }
 0x313   :  { %1864 = vst [vmem:[%s3072_s7 + $0xb0] sm:$0xff] %v1794_v15 }
 0x336   :  { %v1798_v59 = vpop.f32.mrb[110].mxu1 }
 0x337   :  { %v2221_v47 = vadd.f32 %v2935_v49, %v1798_v59  ;;  %v1800_v60 = vpop.f32.mrb[111].mxu1 }
 0x339   :  { %1865 = vst [vmem:[%s3072_s7 + $0xb8] sm:$0xff] %v2221_v47 }
 0x33a   :  { %v1803_v61 = vpop.f32.mrb[112].mxu1 }
 0x33b   :  { %v2222_v62 = vadd.f32 %v2935_v49, %v1803_v61  ;;  %v1805_v20 = vpop.f32.mrb[113].mxu1 }
 0x33d   :  { %1866 = vst [vmem:[%s3072_s7 + $0xc0] sm:$0xff] %v2222_v62 }
 0x33e   :  { %v1808_v28 = vpop.f32.mrb[114].mxu1 }
 0x33f   :  { %v2223_v48 = vadd.f32 %v2935_v49, %v1808_v28  ;;  %v1810_v2 = vpop.f32.mrb[115].mxu1 }
 0x341   :  { %1867 = vst [vmem:[%s3072_s7 + $0xc8] sm:$0xff] %v2223_v48 }
 0x342   :  { %v1813_v30 = vpop.f32.mrb[116].mxu1 }
 0x343   :  { %v2224_v4 = vadd.f32 %v2935_v49, %v1813_v30  ;;  %v1815_v5 = vpop.f32.mrb[117].mxu1 }
 0x345   :  { %1868 = vst [vmem:[%s3072_s7 + $0xd0] sm:$0xff] %v2224_v4 }
 0x346   :  { %v1818_v9 = vpop.f32.mrb[118].mxu1 }
 0x347   :  { %v2225_v10 = vadd.f32 %v2935_v49, %v1818_v9  ;;  %v1820_v12 = vpop.f32.mrb[119].mxu1 }
 0x349   :  { %1869 = vst [vmem:[%s3072_s7 + $0xd8] sm:$0xff] %v2225_v10 }
 0x34a   :  { %v1823_v13 = vpop.f32.mrb[120].mxu1 }
 0x34b   :  { %v2226_v14 = vadd.f32 %v2935_v49, %v1823_v13  ;;  %v1825_v40 = vpop.f32.mrb[121].mxu1 }
 0x34d   :  { %1870 = vst [vmem:[%s3072_s7 + $0xe0] sm:$0xff] %v2226_v14 }
 0x34e   :  { %v1828_v45 = vpop.f32.mrb[122].mxu1 }
 0x34f   :  { %v2227_v50 = vadd.f32 %v2935_v49, %v1828_v45  ;;  %v1830_v46 = vpop.f32.mrb[123].mxu1 }
 0x351   :  { %1871 = vst [vmem:[%s3072_s7 + $0xe8] sm:$0xff] %v2227_v50 }
 0x352   :  { %v1833_v18 = vpop.f32.mrb[124].mxu1 }
 0x353   :  { %v2228_v43 = vadd.f32 %v2935_v49, %v1833_v18  ;;  %v1835_v19 = vpop.f32.mrb[125].mxu1 }
 0x355   :  { %1872 = vst [vmem:[%s3072_s7 + $0xf0] sm:$0xff] %v2228_v43 }
 0x356   :  { %v1838_v23 = vpop.f32.mrb[126].mxu1 }
 0x357   :  { %v2229_v22 = vadd.f32 %v2935_v49, %v1838_v23  ;;  %v1840_v8 = vpop.f32.mrb[127].mxu1 }
 0x359   :  { %1873 = vst [vmem:[%s3072_s7 + $0xf8] sm:$0xff] %v2229_v22 }
 0x35a   :  { %1878 = vsyncpa [#allocation3], 1 }
 0x35b   :  { %1879 = vsyncpa [#allocation5], 1 }

</bundles_post_ra>
